<compile_context>
chip_gen: v5e
topology: v5e:2x2
jax: 0.10.0
libtpu: 0.0.40
codegen_flags: <defaults>
</compile_context>

<pallas_src>
import math
from functools import partial

import jax
import jax.numpy as jnp
from jax.experimental import pallas as pl
from jax.experimental.pallas import tpu as pltpu


def _round_up(x, m):
    return ((x + m - 1) // m) * m


def _self_attention_kernel(
    xq_ref, xkv_ref,                       # (1, tq, Dp), (1, tk, Dp)  bf16
    wq_ref, wk_ref, wv_ref, wo_ref,        # (Dp, Dp) x3, (Dp, Dop)    bf16, (in,out)
    bq_ref, bk_ref, bv_ref, bo_ref,        # (1, Dp) x3, (1, Dop)      f32
    o_ref,                                 # (1, tq, Dop)
    q_sc,                                  # (tq, Dp)        bf16
    k_cache, v_cache,                      # (n_kv, tk, Dp)  bf16  (persistent K/V cache)
    m_sc, l_sc,                            # (tq, 1)         f32
    acc_sc,                                # (tq, Dp)        f32
    *, s_real, tk, need_mask,
):
    qi = pl.program_id(1)
    ki = pl.program_id(2)

    # --- K/V projection cache: filled once per batch element (first q tile) --
    @pl.when(qi == 0)
    def _():
        xkv = xkv_ref[0]                                               # (tk, Dp) bf16
        k = jnp.dot(xkv, wk_ref[...], preferred_element_type=jnp.float32) + bk_ref[...]
        v = jnp.dot(xkv, wv_ref[...], preferred_element_type=jnp.float32) + bv_ref[...]
        k_cache[ki] = k.astype(k_cache.dtype)
        v_cache[ki] = v.astype(v_cache.dtype)

    # --- per-q-tile init: q projection (1/sqrt(D) pre-folded into wq/bq) -----
    @pl.when(ki == 0)
    def _():
        xq = xq_ref[0]                                                 # (tq, Dp) bf16
        q = jnp.dot(xq, wq_ref[...], preferred_element_type=jnp.float32) + bq_ref[...]
        q_sc[...] = q.astype(q_sc.dtype)
        m_sc[...] = jnp.full_like(m_sc, -jnp.inf)
        l_sc[...] = jnp.zeros_like(l_sc)
        acc_sc[...] = jnp.zeros_like(acc_sc)

    k = k_cache[ki]                                                    # (tk, Dp) bf16
    v = v_cache[ki]                                                    # (tk, Dp) bf16

    # scores: contract last dims (no transposed copy of k); bf16 in, f32 accum
    s = jax.lax.dot_general(
        q_sc[...], k,
        dimension_numbers=(((1,), (1,)), ((), ())),
        preferred_element_type=jnp.float32,
    )                                                                  # (tq, tk) f32

    if need_mask:  # static: only when S was padded up to a tile multiple
        col = ki * tk + jax.lax.broadcasted_iota(jnp.int32, s.shape, 1)
        s = jnp.where(col < s_real, s, -1e30)

    # --- online softmax (all state and math in f32) --------------------------
    m_new = jnp.maximum(m_sc[...], jnp.max(s, axis=-1, keepdims=True))
    alpha = jnp.exp(m_sc[...] - m_new)
    p = jnp.exp(s - m_new)
    l_sc[...] = alpha * l_sc[...] + jnp.sum(p, axis=-1, keepdims=True)
    acc_sc[...] = alpha * acc_sc[...] + jnp.dot(
        p.astype(v.dtype), v, preferred_element_type=jnp.float32)
    m_sc[...] = m_new

    # --- finalize: normalize + output projection -----------------------------
    @pl.when(ki == pl.num_programs(2) - 1)
    def _():
        z = acc_sc[...] * pl.reciprocal(l_sc[...], approx=False)       # (tq, Dp) f32
        out = jnp.dot(z.astype(wo_ref.dtype), wo_ref[...],
                      preferred_element_type=jnp.float32) + bo_ref[...]
        o_ref[0] = out.astype(o_ref.dtype)                             # (tq, Dop)


def self_attention(x, w_qkv, b_qkv, w_o, b_o, *, tile=None):
    """x: (B, S, D); w_qkv: (3D, D); b_qkv: (3D,); w_o: (Dout, D); b_o: (Dout,)."""
    B, S, D = x.shape
    Dout = w_o.shape[0]
    scale = 1.0 / math.sqrt(D)

    f32, bf16 = jnp.float32, jnp.bfloat16

    # Lane-dense feature dims (exact math: padded columns/rows are zero).
    Dp = _round_up(D, 128)
    Dop = _round_up(Dout, 128)

    # Sequence tiling: 256 is the v6e/v7x sweet spot (and a multiple of 128 for
    # v5e); short sequences use a single 8-aligned tile.  S is zero-padded up
    # to a tile multiple; padded keys are masked in-kernel.
    if tile is None:
        tile = 256 if S >= 256 else _round_up(S, 8)
    tile = _round_up(min(tile, _round_up(S, 8)), 8)
    S_pad = _round_up(S, tile)
    tq = tk = tile
    n_t = S_pad // tile
    need_mask = S_pad != S

    # Inputs / MXU operands in bf16 (f32 accumulation in-kernel); biases stay
    # f32 (they are not MXU operands and their bytes are negligible).
    x_pad = jnp.zeros((B, S_pad, Dp), bf16).at[:, :S, :D].set(x.astype(bf16))

    # Pre-split + pre-transposed (in, out) weights; scale folded into wq/bq.
    wq = jnp.zeros((Dp, Dp), f32).at[:D, :D].set(w_qkv[:D].T * scale).astype(bf16)
    wk = jnp.zeros((Dp, Dp), f32).at[:D, :D].set(w_qkv[D:2 * D].T).astype(bf16)
    wv = jnp.zeros((Dp, Dp), f32).at[:D, :D].set(w_qkv[2 * D:].T).astype(bf16)
    wo = jnp.zeros((Dp, Dop), f32).at[:D, :Dout].set(w_o.T).astype(bf16)
    bq = jnp.zeros((1, Dp), f32).at[:, :D].set(b_qkv[:D] * scale)
    bk = jnp.zeros((1, Dp), f32).at[:, :D].set(b_qkv[D:2 * D])
    bv = jnp.zeros((1, Dp), f32).at[:, :D].set(b_qkv[2 * D:])
    bo = jnp.zeros((1, Dop), f32).at[:, :Dout].set(b_o)

    kernel = partial(_self_attention_kernel, s_real=S, tk=tk, need_mask=need_mask)

    # VMEM budget (bytes): weights + biases + double-buffered x/out tiles +
    # scratch (q, K/V cache, m/l/acc).  2x headroom, capped at 56 MiB so the
    # same tiling also fits v7x's 64 MiB physical VMEM (v5e/v6e have 128 MiB).
    est = (
        2 * (3 * Dp * Dp + Dp * Dop) * 2      # weights (worst case double-buffered), bf16
        + 2 * (3 * Dp + Dop) * 4              # biases (double-buffered), f32
        + 2 * (tq + tk) * Dp * 2              # x tiles (double-buffered), bf16
        + 2 * tq * Dop * 4                    # out tile (double-buffered), f32
        + tq * Dp * 2                         # q scratch, bf16
        + 2 * n_t * tk * Dp * 2               # K/V caches, bf16
        + tq * Dp * 4 + 2 * tq * 4            # acc + m + l, f32
    )
    vmem_limit = int(max(32 << 20, min(2 * est + (4 << 20), 56 << 20)))

    grid = (B, n_t, n_t)

    def x_q_map(b, qi, ki):
        return (b, qi, 0)

    def x_kv_map(b, qi, ki):
        # Stream x for the K/V projection only while filling the cache
        # (qi == 0); afterwards pin the block index so no DMA is re-issued.
        return (b, jnp.where(qi == 0, ki, 0), 0)

    def out_map(b, qi, ki):
        return (b, qi, 0)

    def _call(single_buffer_weights):
        if single_buffer_weights:
            # Constant-index operands: single-buffered (halves weight VMEM).
            def const_spec(shape):
                return pl.BlockSpec(shape, lambda *_: (0,) * len(shape),
                                    pipeline_mode=pl.Buffered(1))
        else:
            def const_spec(shape):
                return pl.BlockSpec(shape, lambda *_: (0,) * len(shape))

        return pl.pallas_call(
            kernel,
            out_shape=jax.ShapeDtypeStruct((B, S_pad, Dop), x.dtype),
            grid_spec=pltpu.PrefetchScalarGridSpec(
                num_scalar_prefetch=0,
                grid=grid,
                in_specs=[
                    pl.BlockSpec((1, tq, Dp), x_q_map),    # x for q projection
                    pl.BlockSpec((1, tk, Dp), x_kv_map),   # x for k/v projection
                    const_spec((Dp, Dp)),                  # wq (scale folded)
                    const_spec((Dp, Dp)),                  # wk
                    const_spec((Dp, Dp)),                  # wv
                    const_spec((Dp, Dop)),                 # wo
                    const_spec((1, Dp)),                   # bq (scale folded)
                    const_spec((1, Dp)),                   # bk
                    const_spec((1, Dp)),                   # bv
                    const_spec((1, Dop)),                  # bo
                ],
                out_specs=pl.BlockSpec((1, tq, Dop), out_map),
                scratch_shapes=[
                    pltpu.VMEM((tq, Dp), bf16),            # q tile
                    pltpu.VMEM((n_t, tk, Dp), bf16),       # K cache (whole sequence)
                    pltpu.VMEM((n_t, tk, Dp), bf16),       # V cache (whole sequence)
                    pltpu.VMEM((tq, 1), f32),              # running max m
                    pltpu.VMEM((tq, 1), f32),              # running sum l
                    pltpu.VMEM((tq, Dp), f32),             # output accumulator
                ],
            ),
            compiler_params=pltpu.CompilerParams(
                # Batch axis shards across TensorCores (v7x megacore); q/kv
                # axes are sequential because the K/V cache filled at qi == 0
                # is reused by later q tiles of the same batch element.
                dimension_semantics=("parallel", "arbitrary", "arbitrary"),
                vmem_limit_bytes=vmem_limit,
            ),
        )(x_pad, x_pad, wq, wk, wv, wo, bq, bk, bv, bo)

    try:
        out_padded = _call(single_buffer_weights=True)
    except Exception:
        # pl.Buffered(1) / pipeline_mode unsupported in this JAX build — fall
        # back to default double-buffered weights (same numerics, more VMEM).
        out_padded = _call(single_buffer_weights=False)

    return out_padded[:, :S, :Dout]


def _reference(x, w_qkv, b_qkv, w_o, b_o):
    D = x.shape[-1]
    qkv = jnp.einsum("bsd,ed->bse", x, w_qkv) + b_qkv
    q, k, v = qkv[..., :D], qkv[..., D:2 * D], qkv[..., 2 * D:]
    s = jnp.einsum("bqd,bkd->bqk", q, k) / math.sqrt(D)
    p = jax.nn.softmax(s, axis=-1)
    z = jnp.einsum("bqk,bkd->bqd", p, v)
    return jnp.einsum("bsd,od->bso", z, w_o) + b_o


if __name__ == "__main__":
    B, S, D, Dout = 2, 8, 32, 32  # input_dim=32, output_dim=32

    key = jax.random.PRNGKey(0)
    kx, kw1, kb1, kw2, kb2 = jax.random.split(key, 5)

    x = jax.random.normal(kx, (B, S, D), dtype=jnp.float32)

    # Deterministic parameter init (mimicking nn.Linear's uniform(-1/sqrt(in), 1/sqrt(in)))
    lim1 = 1.0 / math.sqrt(D)
    w_qkv = jax.random.uniform(kw1, (3 * D, D), jnp.float32, -lim1, lim1)
    b_qkv = jax.random.uniform(kb1, (3 * D,), jnp.float32, -lim1, lim1)
    w_o = jax.random.uniform(kw2, (Dout, D), jnp.float32, -lim1, lim1)
    b_o = jax.random.uniform(kb2, (Dout,), jnp.float32, -lim1, lim1)

    out = self_attention(x, w_qkv, b_qkv, w_o, b_o)
    out = jax.block_until_ready(out)

    ref = _reference(x, w_qkv, b_qkv, w_o, b_o)
    assert out.shape == (B, S, Dout)
    # bf16 MXU operands (f32 accumulation, f32 softmax state) vs. the pure-f32
    # reference -> relaxed tolerance.
    assert jnp.allclose(out, ref, atol=3e-2, rtol=3e-2), "mismatch vs reference"

    print("KERNEL_OK")
</pallas_src>

<mosaic_0001>
module attributes {stable_mosaic.version = 11 : i64} {
  func.func @_self_attention_kernel(%arg0: i32, %arg1: i32, %arg2: i32, %arg3: memref<1x8x128xbf16, #tpu.memory_space<vmem>>, %arg4: memref<1x8x128xbf16, #tpu.memory_space<vmem>>, %arg5: memref<128x128xbf16, #tpu.memory_space<vmem>>, %arg6: memref<128x128xbf16, #tpu.memory_space<vmem>>, %arg7: memref<128x128xbf16, #tpu.memory_space<vmem>>, %arg8: memref<128x128xbf16, #tpu.memory_space<vmem>>, %arg9: memref<1x128xf32, #tpu.memory_space<vmem>>, %arg10: memref<1x128xf32, #tpu.memory_space<vmem>>, %arg11: memref<1x128xf32, #tpu.memory_space<vmem>>, %arg12: memref<1x128xf32, #tpu.memory_space<vmem>>, %arg13: memref<1x8x128xf32, #tpu.memory_space<vmem>>, %arg14: memref<8x128xbf16, #tpu.memory_space<vmem>>, %arg15: memref<1x8x128xbf16, #tpu.memory_space<vmem>>, %arg16: memref<1x8x128xbf16, #tpu.memory_space<vmem>>, %arg17: memref<8x1xf32, #tpu.memory_space<vmem>>, %arg18: memref<8x1xf32, #tpu.memory_space<vmem>>, %arg19: memref<8x128xf32, #tpu.memory_space<vmem>>) attributes {dimension_semantics = [#tpu.dimension_semantics<parallel>, #tpu.dimension_semantics<arbitrary>, #tpu.dimension_semantics<arbitrary>], iteration_bounds = array<i64: 2, 1, 1>, scalar_prefetch = 0 : i64, scratch_operands = 6 : i64, tpu.core_type = #tpu.core_type<tc>, window_params = [{transform_indices = @transform_0, window_bounds = array<i64: 1, 8, 128>}, {transform_indices = @transform_1, window_bounds = array<i64: 1, 8, 128>}, {pipeline_mode = #tpu.pipeline_mode<synchronous>, transform_indices = @transform_2, window_bounds = array<i64: 128, 128>}, {pipeline_mode = #tpu.pipeline_mode<synchronous>, transform_indices = @transform_3, window_bounds = array<i64: 128, 128>}, {pipeline_mode = #tpu.pipeline_mode<synchronous>, transform_indices = @transform_4, window_bounds = array<i64: 128, 128>}, {pipeline_mode = #tpu.pipeline_mode<synchronous>, transform_indices = @transform_5, window_bounds = array<i64: 128, 128>}, {pipeline_mode = #tpu.pipeline_mode<synchronous>, transform_indices = @transform_6, window_bounds = array<i64: 1, 128>}, {pipeline_mode = #tpu.pipeline_mode<synchronous>, transform_indices = @transform_7, window_bounds = array<i64: 1, 128>}, {pipeline_mode = #tpu.pipeline_mode<synchronous>, transform_indices = @transform_8, window_bounds = array<i64: 1, 128>}, {pipeline_mode = #tpu.pipeline_mode<synchronous>, transform_indices = @transform_9, window_bounds = array<i64: 1, 128>}, {transform_indices = @transform_10, window_bounds = array<i64: 1, 8, 128>}]} {
    %c0_i32 = arith.constant 0 : i32
    %0 = arith.cmpi eq, %arg1, %c0_i32 : i32
    %1 = arith.extui %0 : i1 to i32
    %c0_i32_0 = arith.constant 0 : i32
    %2 = arith.cmpi ne, %1, %c0_i32_0 : i32
    scf.if %2 {
      %c0_27 = arith.constant 0 : index
      %c0_28 = arith.constant 0 : index
      %c0_29 = arith.constant 0 : index
      %41 = vector.load %arg4[%c0_27, %c0_28, %c0_29] : memref<1x8x128xbf16, #tpu.memory_space<vmem>>, vector<1x8x128xbf16>
      %42 = vector.shape_cast %41 : vector<1x8x128xbf16> to vector<8x128xbf16>
      %c0_30 = arith.constant 0 : index
      %c0_31 = arith.constant 0 : index
      %43 = vector.load %arg6[%c0_30, %c0_31] : memref<128x128xbf16, #tpu.memory_space<vmem>>, vector<128x128xbf16>
      %cst_32 = arith.constant dense<0.000000e+00> : vector<8x128xf32>
      %44 = tpu.matmul %42, %43, %cst_32 {dimension_numbers = #tpu.dot_dimension_numbers<[1], [0], [0], [1], [0, 0, 1, 1], [], []>} : vector<8x128xbf16>, vector<128x128xbf16>, vector<8x128xf32> -> vector<8x128xf32>
      %c0_33 = arith.constant 0 : index
      %c0_34 = arith.constant 0 : index
      %45 = vector.load %arg10[%c0_33, %c0_34] : memref<1x128xf32, #tpu.memory_space<vmem>>, vector<1x128xf32>
      %46 = vector.broadcast %45 : vector<1x128xf32> to vector<8x128xf32>
      %47 = arith.addf %44, %46 : vector<8x128xf32>
      %c0_35 = arith.constant 0 : index
      %c0_36 = arith.constant 0 : index
      %48 = vector.load %arg7[%c0_35, %c0_36] : memref<128x128xbf16, #tpu.memory_space<vmem>>, vector<128x128xbf16>
      %cst_37 = arith.constant dense<0.000000e+00> : vector<8x128xf32>
      %49 = tpu.matmul %42, %48, %cst_37 {dimension_numbers = #tpu.dot_dimension_numbers<[1], [0], [0], [1], [0, 0, 1, 1], [], []>} : vector<8x128xbf16>, vector<128x128xbf16>, vector<8x128xf32> -> vector<8x128xf32>
      %c0_38 = arith.constant 0 : index
      %c0_39 = arith.constant 0 : index
      %50 = vector.load %arg11[%c0_38, %c0_39] : memref<1x128xf32, #tpu.memory_space<vmem>>, vector<1x128xf32>
      %51 = vector.broadcast %50 : vector<1x128xf32> to vector<8x128xf32>
      %52 = arith.addf %49, %51 : vector<8x128xf32>
      %53 = arith.truncf %47 : vector<8x128xf32> to vector<8x128xbf16>
      %54 = arith.index_cast %arg2 : i32 to index
      %c0_40 = arith.constant 0 : index
      %c0_41 = arith.constant 0 : index
      %55 = vector.load %arg15[%54, %c0_40, %c0_41] : memref<1x8x128xbf16, #tpu.memory_space<vmem>>, vector<1x8x128xbf16>
      %56 = vector.shape_cast %55 : vector<1x8x128xbf16> to vector<8x128xbf16>
      %57 = vector.shape_cast %53 : vector<8x128xbf16> to vector<1x8x128xbf16>
      tpu.vector_store %arg15[%54, %c0_40, %c0_41], %57 {strides = array<i32>} : memref<1x8x128xbf16, #tpu.memory_space<vmem>>, vector<1x8x128xbf16>,
      %58 = arith.truncf %52 : vector<8x128xf32> to vector<8x128xbf16>
      %59 = arith.index_cast %arg2 : i32 to index
      %c0_42 = arith.constant 0 : index
      %c0_43 = arith.constant 0 : index
      %60 = vector.load %arg16[%59, %c0_42, %c0_43] : memref<1x8x128xbf16, #tpu.memory_space<vmem>>, vector<1x8x128xbf16>
      %61 = vector.shape_cast %60 : vector<1x8x128xbf16> to vector<8x128xbf16>
      %62 = vector.shape_cast %58 : vector<8x128xbf16> to vector<1x8x128xbf16>
      tpu.vector_store %arg16[%59, %c0_42, %c0_43], %62 {strides = array<i32>} : memref<1x8x128xbf16, #tpu.memory_space<vmem>>, vector<1x8x128xbf16>,
    } else {
    }
    %c0_i32_1 = arith.constant 0 : i32
    %3 = arith.cmpi eq, %arg2, %c0_i32_1 : i32
    %4 = arith.extui %3 : i1 to i32
    %c0_i32_2 = arith.constant 0 : i32
    %5 = arith.cmpi ne, %4, %c0_i32_2 : i32
    scf.if %5 {
      %c0_27 = arith.constant 0 : index
      %c0_28 = arith.constant 0 : index
      %c0_29 = arith.constant 0 : index
      %41 = vector.load %arg3[%c0_27, %c0_28, %c0_29] : memref<1x8x128xbf16, #tpu.memory_space<vmem>>, vector<1x8x128xbf16>
      %42 = vector.shape_cast %41 : vector<1x8x128xbf16> to vector<8x128xbf16>
      %c0_30 = arith.constant 0 : index
      %c0_31 = arith.constant 0 : index
      %43 = vector.load %arg5[%c0_30, %c0_31] : memref<128x128xbf16, #tpu.memory_space<vmem>>, vector<128x128xbf16>
      %cst_32 = arith.constant dense<0.000000e+00> : vector<8x128xf32>
      %44 = tpu.matmul %42, %43, %cst_32 {dimension_numbers = #tpu.dot_dimension_numbers<[1], [0], [0], [1], [0, 0, 1, 1], [], []>} : vector<8x128xbf16>, vector<128x128xbf16>, vector<8x128xf32> -> vector<8x128xf32>
      %c0_33 = arith.constant 0 : index
      %c0_34 = arith.constant 0 : index
      %45 = vector.load %arg9[%c0_33, %c0_34] : memref<1x128xf32, #tpu.memory_space<vmem>>, vector<1x128xf32>
      %46 = vector.broadcast %45 : vector<1x128xf32> to vector<8x128xf32>
      %47 = arith.addf %44, %46 : vector<8x128xf32>
      %48 = arith.truncf %47 : vector<8x128xf32> to vector<8x128xbf16>
      %c0_35 = arith.constant 0 : index
      %c0_36 = arith.constant 0 : index
      %49 = vector.load %arg14[%c0_35, %c0_36] : memref<8x128xbf16, #tpu.memory_space<vmem>>, vector<8x128xbf16>
      tpu.vector_store %arg14[%c0_35, %c0_36], %48 {strides = array<i32>} : memref<8x128xbf16, #tpu.memory_space<vmem>>, vector<8x128xbf16>,
      %cst_37 = arith.constant 0xFF800000 : f32
      %50 = vector.broadcast %cst_37 : f32 to vector<8x1xf32>
      %c0_38 = arith.constant 0 : index
      %c0_39 = arith.constant 0 : index
      %51 = vector.load %arg17[%c0_38, %c0_39] : memref<8x1xf32, #tpu.memory_space<vmem>>, vector<8x1xf32>
      tpu.vector_store %arg17[%c0_38, %c0_39], %50 {strides = array<i32>} : memref<8x1xf32, #tpu.memory_space<vmem>>, vector<8x1xf32>,
      %cst_40 = arith.constant 0.000000e+00 : f32
      %52 = vector.broadcast %cst_40 : f32 to vector<8x1xf32>
      %c0_41 = arith.constant 0 : index
      %c0_42 = arith.constant 0 : index
      %53 = vector.load %arg18[%c0_41, %c0_42] : memref<8x1xf32, #tpu.memory_space<vmem>>, vector<8x1xf32>
      tpu.vector_store %arg18[%c0_41, %c0_42], %52 {strides = array<i32>} : memref<8x1xf32, #tpu.memory_space<vmem>>, vector<8x1xf32>,
      %cst_43 = arith.constant 0.000000e+00 : f32
      %54 = vector.broadcast %cst_43 : f32 to vector<8x128xf32>
      %c0_44 = arith.constant 0 : index
      %c0_45 = arith.constant 0 : index
      %55 = vector.load %arg19[%c0_44, %c0_45] : memref<8x128xf32, #tpu.memory_space<vmem>>, vector<8x128xf32>
      tpu.vector_store %arg19[%c0_44, %c0_45], %54 {strides = array<i32>} : memref<8x128xf32, #tpu.memory_space<vmem>>, vector<8x128xf32>,
    } else {
    }
    %6 = arith.index_cast %arg2 : i32 to index
    %c0 = arith.constant 0 : index
    %c0_3 = arith.constant 0 : index
    %7 = vector.load %arg15[%6, %c0, %c0_3] : memref<1x8x128xbf16, #tpu.memory_space<vmem>>, vector<1x8x128xbf16>
    %8 = vector.shape_cast %7 : vector<1x8x128xbf16> to vector<8x128xbf16>
    %9 = arith.index_cast %arg2 : i32 to index
    %c0_4 = arith.constant 0 : index
    %c0_5 = arith.constant 0 : index
    %10 = vector.load %arg16[%9, %c0_4, %c0_5] : memref<1x8x128xbf16, #tpu.memory_space<vmem>>, vector<1x8x128xbf16>
    %11 = vector.shape_cast %10 : vector<1x8x128xbf16> to vector<8x128xbf16>
    %c0_6 = arith.constant 0 : index
    %c0_7 = arith.constant 0 : index
    %12 = vector.load %arg14[%c0_6, %c0_7] : memref<8x128xbf16, #tpu.memory_space<vmem>>, vector<8x128xbf16>
    %cst = arith.constant dense<0.000000e+00> : vector<8x8xf32>
    %13 = tpu.matmul %12, %8, %cst {dimension_numbers = #tpu.dot_dimension_numbers<[1], [1], [0], [0], [0, 0, 1, 0], [], []>} : vector<8x128xbf16>, vector<8x128xbf16>, vector<8x8xf32> -> vector<8x8xf32>
    %c0_8 = arith.constant 0 : index
    %c0_9 = arith.constant 0 : index
    %14 = vector.load %arg17[%c0_8, %c0_9] : memref<8x1xf32, #tpu.memory_space<vmem>>, vector<8x1xf32>
    %cst_10 = arith.constant dense<0xFF800000> : vector<8xf32>
    %15 = vector.multi_reduction <maximumf>, %13, %cst_10 [1] : vector<8x8xf32> to vector<8xf32>
    %16 = vector.shape_cast %15 : vector<8xf32> to vector<8x1xf32>
    %17 = arith.maximumf %14, %16 : vector<8x1xf32>
    %c0_11 = arith.constant 0 : index
    %c0_12 = arith.constant 0 : index
    %18 = vector.load %arg17[%c0_11, %c0_12] : memref<8x1xf32, #tpu.memory_space<vmem>>, vector<8x1xf32>
    %19 = arith.subf %18, %17 : vector<8x1xf32>
    %20 = math.exp %19 : vector<8x1xf32>
    %21 = vector.broadcast %17 : vector<8x1xf32> to vector<8x8xf32>
    %22 = arith.subf %13, %21 : vector<8x8xf32>
    %23 = math.exp %22 : vector<8x8xf32>
    %c0_13 = arith.constant 0 : index
    %c0_14 = arith.constant 0 : index
    %24 = vector.load %arg18[%c0_13, %c0_14] : memref<8x1xf32, #tpu.memory_space<vmem>>, vector<8x1xf32>
    %25 = arith.mulf %20, %24 : vector<8x1xf32>
    %cst_15 = arith.constant dense<0.000000e+00> : vector<8xf32>
    %26 = vector.multi_reduction <add>, %23, %cst_15 [1] : vector<8x8xf32> to vector<8xf32>
    %27 = vector.shape_cast %26 : vector<8xf32> to vector<8x1xf32>
    %28 = arith.addf %25, %27 : vector<8x1xf32>
    %c0_16 = arith.constant 0 : index
    %c0_17 = arith.constant 0 : index
    %29 = vector.load %arg18[%c0_16, %c0_17] : memref<8x1xf32, #tpu.memory_space<vmem>>, vector<8x1xf32>
    tpu.vector_store %arg18[%c0_16, %c0_17], %28 {strides = array<i32>} : memref<8x1xf32, #tpu.memory_space<vmem>>, vector<8x1xf32>,
    %c0_18 = arith.constant 0 : index
    %c0_19 = arith.constant 0 : index
    %30 = vector.load %arg19[%c0_18, %c0_19] : memref<8x128xf32, #tpu.memory_space<vmem>>, vector<8x128xf32>
    %31 = vector.broadcast %20 : vector<8x1xf32> to vector<8x128xf32>
    %32 = arith.mulf %31, %30 : vector<8x128xf32>
    %33 = arith.truncf %23 : vector<8x8xf32> to vector<8x8xbf16>
    %cst_20 = arith.constant dense<0.000000e+00> : vector<8x128xf32>
    %34 = tpu.matmul %33, %11, %cst_20 {dimension_numbers = #tpu.dot_dimension_numbers<[1], [0], [0], [1], [0, 0, 1, 1], [], []>} : vector<8x8xbf16>, vector<8x128xbf16>, vector<8x128xf32> -> vector<8x128xf32>
    %35 = arith.addf %32, %34 : vector<8x128xf32>
    %c0_21 = arith.constant 0 : index
    %c0_22 = arith.constant 0 : index
    %36 = vector.load %arg19[%c0_21, %c0_22] : memref<8x128xf32, #tpu.memory_space<vmem>>, vector<8x128xf32>
    tpu.vector_store %arg19[%c0_21, %c0_22], %35 {strides = array<i32>} : memref<8x128xf32, #tpu.memory_space<vmem>>, vector<8x128xf32>,
    %c0_23 = arith.constant 0 : index
    %c0_24 = arith.constant 0 : index
    %37 = vector.load %arg17[%c0_23, %c0_24] : memref<8x1xf32, #tpu.memory_space<vmem>>, vector<8x1xf32>
    tpu.vector_store %arg17[%c0_23, %c0_24], %17 {strides = array<i32>} : memref<8x1xf32, #tpu.memory_space<vmem>>, vector<8x1xf32>,
    %c0_i32_25 = arith.constant 0 : i32
    %38 = arith.cmpi eq, %arg2, %c0_i32_25 : i32
    %39 = arith.extui %38 : i1 to i32
    %c0_i32_26 = arith.constant 0 : i32
    %40 = arith.cmpi ne, %39, %c0_i32_26 : i32
    scf.if %40 {
      %c0_27 = arith.constant 0 : index
      %c0_28 = arith.constant 0 : index
      %41 = vector.load %arg19[%c0_27, %c0_28] : memref<8x128xf32, #tpu.memory_space<vmem>>, vector<8x128xf32>
      %c0_29 = arith.constant 0 : index
      %c0_30 = arith.constant 0 : index
      %42 = vector.load %arg18[%c0_29, %c0_30] : memref<8x1xf32, #tpu.memory_space<vmem>>, vector<8x1xf32>
      %43 = tpu.reciprocal %42 : vector<8x1xf32> -> vector<8x1xf32>
      %44 = vector.broadcast %43 : vector<8x1xf32> to vector<8x128xf32>
      %45 = arith.mulf %41, %44 : vector<8x128xf32>
      %46 = arith.truncf %45 : vector<8x128xf32> to vector<8x128xbf16>
      %c0_31 = arith.constant 0 : index
      %c0_32 = arith.constant 0 : index
      %47 = vector.load %arg8[%c0_31, %c0_32] : memref<128x128xbf16, #tpu.memory_space<vmem>>, vector<128x128xbf16>
      %cst_33 = arith.constant dense<0.000000e+00> : vector<8x128xf32>
      %48 = tpu.matmul %46, %47, %cst_33 {dimension_numbers = #tpu.dot_dimension_numbers<[1], [0], [0], [1], [0, 0, 1, 1], [], []>} : vector<8x128xbf16>, vector<128x128xbf16>, vector<8x128xf32> -> vector<8x128xf32>
      %c0_34 = arith.constant 0 : index
      %c0_35 = arith.constant 0 : index
      %49 = vector.load %arg12[%c0_34, %c0_35] : memref<1x128xf32, #tpu.memory_space<vmem>>, vector<1x128xf32>
      %50 = vector.broadcast %49 : vector<1x128xf32> to vector<8x128xf32>
      %51 = arith.addf %48, %50 : vector<8x128xf32>
      %c0_36 = arith.constant 0 : index
      %c0_37 = arith.constant 0 : index
      %c0_38 = arith.constant 0 : index
      %52 = vector.load %arg13[%c0_36, %c0_37, %c0_38] : memref<1x8x128xf32, #tpu.memory_space<vmem>>, vector<1x8x128xf32>
      %53 = vector.shape_cast %52 : vector<1x8x128xf32> to vector<8x128xf32>
      %54 = vector.shape_cast %51 : vector<8x128xf32> to vector<1x8x128xf32>
      tpu.vector_store %arg13[%c0_36, %c0_37, %c0_38], %54 {strides = array<i32>} : memref<1x8x128xf32, #tpu.memory_space<vmem>>, vector<1x8x128xf32>,
    } else {
    }
    return
  }
  func.func @transform_0(%arg0: i32, %arg1: i32, %arg2: i32) -> (i32, i32, i32) {
    %c0_i32 = arith.constant 0 : i32
    %c0_i32_0 = arith.constant 0 : i32
    return %arg0, %arg1, %c0_i32 : i32, i32, i32
  }
  func.func @transform_1(%arg0: i32, %arg1: i32, %arg2: i32) -> (i32, i32, i32) {
    %c0_i32 = arith.constant 0 : i32
    %0 = arith.cmpi eq, %arg1, %c0_i32 : i32
    %c0_i32_0 = arith.constant 0 : i32
    %1 = arith.select %0, %arg2, %c0_i32_0 : i32
    %c0_i32_1 = arith.constant 0 : i32
    %c0_i32_2 = arith.constant 0 : i32
    return %arg0, %1, %c0_i32_1 : i32, i32, i32
  }
  func.func @transform_2(%arg0: i32, %arg1: i32, %arg2: i32) -> (i32, i32) {
    %c0_i32 = arith.constant 0 : i32
    %c0_i32_0 = arith.constant 0 : i32
    %c0_i32_1 = arith.constant 0 : i32
    return %c0_i32, %c0_i32_0 : i32, i32
  }
  func.func @transform_3(%arg0: i32, %arg1: i32, %arg2: i32) -> (i32, i32) {
    %c0_i32 = arith.constant 0 : i32
    %c0_i32_0 = arith.constant 0 : i32
    %c0_i32_1 = arith.constant 0 : i32
    return %c0_i32, %c0_i32_0 : i32, i32
  }
  func.func @transform_4(%arg0: i32, %arg1: i32, %arg2: i32) -> (i32, i32) {
    %c0_i32 = arith.constant 0 : i32
    %c0_i32_0 = arith.constant 0 : i32
    %c0_i32_1 = arith.constant 0 : i32
    return %c0_i32, %c0_i32_0 : i32, i32
  }
  func.func @transform_5(%arg0: i32, %arg1: i32, %arg2: i32) -> (i32, i32) {
    %c0_i32 = arith.constant 0 : i32
    %c0_i32_0 = arith.constant 0 : i32
    %c0_i32_1 = arith.constant 0 : i32
    return %c0_i32, %c0_i32_0 : i32, i32
  }
  func.func @transform_6(%arg0: i32, %arg1: i32, %arg2: i32) -> (i32, i32) {
    %c0_i32 = arith.constant 0 : i32
    %c0_i32_0 = arith.constant 0 : i32
    %c0_i32_1 = arith.constant 0 : i32
    return %c0_i32, %c0_i32_0 : i32, i32
  }
  func.func @transform_7(%arg0: i32, %arg1: i32, %arg2: i32) -> (i32, i32) {
    %c0_i32 = arith.constant 0 : i32
    %c0_i32_0 = arith.constant 0 : i32
    %c0_i32_1 = arith.constant 0 : i32
    return %c0_i32, %c0_i32_0 : i32, i32
  }
  func.func @transform_8(%arg0: i32, %arg1: i32, %arg2: i32) -> (i32, i32) {
    %c0_i32 = arith.constant 0 : i32
    %c0_i32_0 = arith.constant 0 : i32
    %c0_i32_1 = arith.constant 0 : i32
    return %c0_i32, %c0_i32_0 : i32, i32
  }
  func.func @transform_9(%arg0: i32, %arg1: i32, %arg2: i32) -> (i32, i32) {
    %c0_i32 = arith.constant 0 : i32
    %c0_i32_0 = arith.constant 0 : i32
    %c0_i32_1 = arith.constant 0 : i32
    return %c0_i32, %c0_i32_0 : i32, i32
  }
  func.func @transform_10(%arg0: i32, %arg1: i32, %arg2: i32) -> (i32, i32, i32) {
    %c0_i32 = arith.constant 0 : i32
    %c0_i32_0 = arith.constant 0 : i32
    return %arg0, %arg1, %c0_i32 : i32, i32, i32
  }
}

module attributes {stable_mosaic.version = 11 : i64} {
  func.func @_self_attention_kernel(%arg0: i32, %arg1: i32, %arg2: i32, %arg3: memref<1x8x128xbf16, #tpu.memory_space<vmem>>, %arg4: memref<1x8x128xbf16, #tpu.memory_space<vmem>>, %arg5: memref<128x128xbf16, #tpu.memory_space<vmem>>, %arg6: memref<128x128xbf16, #tpu.memory_space<vmem>>, %arg7: memref<128x128xbf16, #tpu.memory_space<vmem>>, %arg8: memref<128x128xbf16, #tpu.memory_space<vmem>>, %arg9: memref<1x128xf32, #tpu.memory_space<vmem>>, %arg10: memref<1x128xf32, #tpu.memory_space<vmem>>, %arg11: memref<1x128xf32, #tpu.memory_space<vmem>>, %arg12: memref<1x128xf32, #tpu.memory_space<vmem>>, %arg13: memref<1x8x128xf32, #tpu.memory_space<vmem>>, %arg14: memref<8x128xbf16, #tpu.memory_space<vmem>>, %arg15: memref<1x8x128xbf16, #tpu.memory_space<vmem>>, %arg16: memref<1x8x128xbf16, #tpu.memory_space<vmem>>, %arg17: memref<8x1xf32, #tpu.memory_space<vmem>>, %arg18: memref<8x1xf32, #tpu.memory_space<vmem>>, %arg19: memref<8x128xf32, #tpu.memory_space<vmem>>) attributes {dimension_semantics = [#tpu.dimension_semantics<parallel>, #tpu.dimension_semantics<arbitrary>, #tpu.dimension_semantics<arbitrary>], iteration_bounds = array<i64: 2, 1, 1>, scalar_prefetch = 0 : i64, scratch_operands = 6 : i64, tpu.core_type = #tpu.core_type<tc>, window_params = [{transform_indices = @transform_0, window_bounds = array<i64: 1, 8, 128>}, {transform_indices = @transform_1, window_bounds = array<i64: 1, 8, 128>}, {pipeline_mode = #tpu.pipeline_mode<synchronous>, transform_indices = @transform_2, window_bounds = array<i64: 128, 128>}, {pipeline_mode = #tpu.pipeline_mode<synchronous>, transform_indices = @transform_3, window_bounds = array<i64: 128, 128>}, {pipeline_mode = #tpu.pipeline_mode<synchronous>, transform_indices = @transform_4, window_bounds = array<i64: 128, 128>}, {pipeline_mode = #tpu.pipeline_mode<synchronous>, transform_indices = @transform_5, window_bounds = array<i64: 128, 128>}, {pipeline_mode = #tpu.pipeline_mode<synchronous>, transform_indices = @transform_6, window_bounds = array<i64: 1, 128>}, {pipeline_mode = #tpu.pipeline_mode<synchronous>, transform_indices = @transform_7, window_bounds = array<i64: 1, 128>}, {pipeline_mode = #tpu.pipeline_mode<synchronous>, transform_indices = @transform_8, window_bounds = array<i64: 1, 128>}, {pipeline_mode = #tpu.pipeline_mode<synchronous>, transform_indices = @transform_9, window_bounds = array<i64: 1, 128>}, {transform_indices = @transform_10, window_bounds = array<i64: 1, 8, 128>}]} {
    %c0_i32 = arith.constant 0 : i32
    %0 = arith.cmpi eq, %arg1, %c0_i32 : i32
    %1 = arith.extui %0 : i1 to i32
    %c0_i32_0 = arith.constant 0 : i32
    %2 = arith.cmpi ne, %1, %c0_i32_0 : i32
    scf.if %2 {
      %c0_27 = arith.constant 0 : index
      %c0_28 = arith.constant 0 : index
      %c0_29 = arith.constant 0 : index
      %41 = vector.load %arg4[%c0_27, %c0_28, %c0_29] : memref<1x8x128xbf16, #tpu.memory_space<vmem>>, vector<1x8x128xbf16>
      %42 = vector.shape_cast %41 : vector<1x8x128xbf16> to vector<8x128xbf16>
      %c0_30 = arith.constant 0 : index
      %c0_31 = arith.constant 0 : index
      %43 = vector.load %arg6[%c0_30, %c0_31] : memref<128x128xbf16, #tpu.memory_space<vmem>>, vector<128x128xbf16>
      %cst_32 = arith.constant dense<0.000000e+00> : vector<8x128xf32>
      %44 = tpu.matmul %42, %43, %cst_32 {dimension_numbers = #tpu.dot_dimension_numbers<[1], [0], [0], [1], [0, 0, 1, 1], [], []>} : vector<8x128xbf16>, vector<128x128xbf16>, vector<8x128xf32> -> vector<8x128xf32>
      %c0_33 = arith.constant 0 : index
      %c0_34 = arith.constant 0 : index
      %45 = vector.load %arg10[%c0_33, %c0_34] : memref<1x128xf32, #tpu.memory_space<vmem>>, vector<1x128xf32>
      %46 = vector.broadcast %45 : vector<1x128xf32> to vector<8x128xf32>
      %47 = arith.addf %44, %46 : vector<8x128xf32>
      %c0_35 = arith.constant 0 : index
      %c0_36 = arith.constant 0 : index
      %48 = vector.load %arg7[%c0_35, %c0_36] : memref<128x128xbf16, #tpu.memory_space<vmem>>, vector<128x128xbf16>
      %cst_37 = arith.constant dense<0.000000e+00> : vector<8x128xf32>
      %49 = tpu.matmul %42, %48, %cst_37 {dimension_numbers = #tpu.dot_dimension_numbers<[1], [0], [0], [1], [0, 0, 1, 1], [], []>} : vector<8x128xbf16>, vector<128x128xbf16>, vector<8x128xf32> -> vector<8x128xf32>
      %c0_38 = arith.constant 0 : index
      %c0_39 = arith.constant 0 : index
      %50 = vector.load %arg11[%c0_38, %c0_39] : memref<1x128xf32, #tpu.memory_space<vmem>>, vector<1x128xf32>
      %51 = vector.broadcast %50 : vector<1x128xf32> to vector<8x128xf32>
      %52 = arith.addf %49, %51 : vector<8x128xf32>
      %53 = arith.truncf %47 : vector<8x128xf32> to vector<8x128xbf16>
      %54 = arith.index_cast %arg2 : i32 to index
      %c0_40 = arith.constant 0 : index
      %c0_41 = arith.constant 0 : index
      %55 = vector.load %arg15[%54, %c0_40, %c0_41] : memref<1x8x128xbf16, #tpu.memory_space<vmem>>, vector<1x8x128xbf16>
      %56 = vector.shape_cast %55 : vector<1x8x128xbf16> to vector<8x128xbf16>
      %57 = vector.shape_cast %53 : vector<8x128xbf16> to vector<1x8x128xbf16>
      tpu.vector_store %arg15[%54, %c0_40, %c0_41], %57 {strides = array<i32>} : memref<1x8x128xbf16, #tpu.memory_space<vmem>>, vector<1x8x128xbf16>,
      %58 = arith.truncf %52 : vector<8x128xf32> to vector<8x128xbf16>
      %59 = arith.index_cast %arg2 : i32 to index
      %c0_42 = arith.constant 0 : index
      %c0_43 = arith.constant 0 : index
      %60 = vector.load %arg16[%59, %c0_42, %c0_43] : memref<1x8x128xbf16, #tpu.memory_space<vmem>>, vector<1x8x128xbf16>
      %61 = vector.shape_cast %60 : vector<1x8x128xbf16> to vector<8x128xbf16>
      %62 = vector.shape_cast %58 : vector<8x128xbf16> to vector<1x8x128xbf16>
      tpu.vector_store %arg16[%59, %c0_42, %c0_43], %62 {strides = array<i32>} : memref<1x8x128xbf16, #tpu.memory_space<vmem>>, vector<1x8x128xbf16>,
    } else {
    }
    %c0_i32_1 = arith.constant 0 : i32
    %3 = arith.cmpi eq, %arg2, %c0_i32_1 : i32
    %4 = arith.extui %3 : i1 to i32
    %c0_i32_2 = arith.constant 0 : i32
    %5 = arith.cmpi ne, %4, %c0_i32_2 : i32
    scf.if %5 {
      %c0_27 = arith.constant 0 : index
      %c0_28 = arith.constant 0 : index
      %c0_29 = arith.constant 0 : index
      %41 = vector.load %arg3[%c0_27, %c0_28, %c0_29] : memref<1x8x128xbf16, #tpu.memory_space<vmem>>, vector<1x8x128xbf16>
      %42 = vector.shape_cast %41 : vector<1x8x128xbf16> to vector<8x128xbf16>
      %c0_30 = arith.constant 0 : index
      %c0_31 = arith.constant 0 : index
      %43 = vector.load %arg5[%c0_30, %c0_31] : memref<128x128xbf16, #tpu.memory_space<vmem>>, vector<128x128xbf16>
      %cst_32 = arith.constant dense<0.000000e+00> : vector<8x128xf32>
      %44 = tpu.matmul %42, %43, %cst_32 {dimension_numbers = #tpu.dot_dimension_numbers<[1], [0], [0], [1], [0, 0, 1, 1], [], []>} : vector<8x128xbf16>, vector<128x128xbf16>, vector<8x128xf32> -> vector<8x128xf32>
      %c0_33 = arith.constant 0 : index
      %c0_34 = arith.constant 0 : index
      %45 = vector.load %arg9[%c0_33, %c0_34] : memref<1x128xf32, #tpu.memory_space<vmem>>, vector<1x128xf32>
      %46 = vector.broadcast %45 : vector<1x128xf32> to vector<8x128xf32>
      %47 = arith.addf %44, %46 : vector<8x128xf32>
      %48 = arith.truncf %47 : vector<8x128xf32> to vector<8x128xbf16>
      %c0_35 = arith.constant 0 : index
      %c0_36 = arith.constant 0 : index
      %49 = vector.load %arg14[%c0_35, %c0_36] : memref<8x128xbf16, #tpu.memory_space<vmem>>, vector<8x128xbf16>
      tpu.vector_store %arg14[%c0_35, %c0_36], %48 {strides = array<i32>} : memref<8x128xbf16, #tpu.memory_space<vmem>>, vector<8x128xbf16>,
      %cst_37 = arith.constant 0xFF800000 : f32
      %50 = vector.broadcast %cst_37 : f32 to vector<8x1xf32>
      %c0_38 = arith.constant 0 : index
      %c0_39 = arith.constant 0 : index
      %51 = vector.load %arg17[%c0_38, %c0_39] : memref<8x1xf32, #tpu.memory_space<vmem>>, vector<8x1xf32>
      tpu.vector_store %arg17[%c0_38, %c0_39], %50 {strides = array<i32>} : memref<8x1xf32, #tpu.memory_space<vmem>>, vector<8x1xf32>,
      %cst_40 = arith.constant 0.000000e+00 : f32
      %52 = vector.broadcast %cst_40 : f32 to vector<8x1xf32>
      %c0_41 = arith.constant 0 : index
      %c0_42 = arith.constant 0 : index
      %53 = vector.load %arg18[%c0_41, %c0_42] : memref<8x1xf32, #tpu.memory_space<vmem>>, vector<8x1xf32>
      tpu.vector_store %arg18[%c0_41, %c0_42], %52 {strides = array<i32>} : memref<8x1xf32, #tpu.memory_space<vmem>>, vector<8x1xf32>,
      %cst_43 = arith.constant 0.000000e+00 : f32
      %54 = vector.broadcast %cst_43 : f32 to vector<8x128xf32>
      %c0_44 = arith.constant 0 : index
      %c0_45 = arith.constant 0 : index
      %55 = vector.load %arg19[%c0_44, %c0_45] : memref<8x128xf32, #tpu.memory_space<vmem>>, vector<8x128xf32>
      tpu.vector_store %arg19[%c0_44, %c0_45], %54 {strides = array<i32>} : memref<8x128xf32, #tpu.memory_space<vmem>>, vector<8x128xf32>,
    } else {
    }
    %6 = arith.index_cast %arg2 : i32 to index
    %c0 = arith.constant 0 : index
    %c0_3 = arith.constant 0 : index
    %7 = vector.load %arg15[%6, %c0, %c0_3] : memref<1x8x128xbf16, #tpu.memory_space<vmem>>, vector<1x8x128xbf16>
    %8 = vector.shape_cast %7 : vector<1x8x128xbf16> to vector<8x128xbf16>
    %9 = arith.index_cast %arg2 : i32 to index
    %c0_4 = arith.constant 0 : index
    %c0_5 = arith.constant 0 : index
    %10 = vector.load %arg16[%9, %c0_4, %c0_5] : memref<1x8x128xbf16, #tpu.memory_space<vmem>>, vector<1x8x128xbf16>
    %11 = vector.shape_cast %10 : vector<1x8x128xbf16> to vector<8x128xbf16>
    %c0_6 = arith.constant 0 : index
    %c0_7 = arith.constant 0 : index
    %12 = vector.load %arg14[%c0_6, %c0_7] : memref<8x128xbf16, #tpu.memory_space<vmem>>, vector<8x128xbf16>
    %cst = arith.constant dense<0.000000e+00> : vector<8x8xf32>
    %13 = tpu.matmul %12, %8, %cst {dimension_numbers = #tpu.dot_dimension_numbers<[1], [1], [0], [0], [0, 0, 1, 0], [], []>} : vector<8x128xbf16>, vector<8x128xbf16>, vector<8x8xf32> -> vector<8x8xf32>
    %c0_8 = arith.constant 0 : index
    %c0_9 = arith.constant 0 : index
    %14 = vector.load %arg17[%c0_8, %c0_9] : memref<8x1xf32, #tpu.memory_space<vmem>>, vector<8x1xf32>
    %cst_10 = arith.constant dense<0xFF800000> : vector<8xf32>
    %15 = vector.multi_reduction <maximumf>, %13, %cst_10 [1] : vector<8x8xf32> to vector<8xf32>
    %16 = vector.shape_cast %15 : vector<8xf32> to vector<8x1xf32>
    %17 = arith.maximumf %14, %16 : vector<8x1xf32>
    %c0_11 = arith.constant 0 : index
    %c0_12 = arith.constant 0 : index
    %18 = vector.load %arg17[%c0_11, %c0_12] : memref<8x1xf32, #tpu.memory_space<vmem>>, vector<8x1xf32>
    %19 = arith.subf %18, %17 : vector<8x1xf32>
    %20 = math.exp %19 : vector<8x1xf32>
    %21 = vector.broadcast %17 : vector<8x1xf32> to vector<8x8xf32>
    %22 = arith.subf %13, %21 : vector<8x8xf32>
    %23 = math.exp %22 : vector<8x8xf32>
    %c0_13 = arith.constant 0 : index
    %c0_14 = arith.constant 0 : index
    %24 = vector.load %arg18[%c0_13, %c0_14] : memref<8x1xf32, #tpu.memory_space<vmem>>, vector<8x1xf32>
    %25 = arith.mulf %20, %24 : vector<8x1xf32>
    %cst_15 = arith.constant dense<0.000000e+00> : vector<8xf32>
    %26 = vector.multi_reduction <add>, %23, %cst_15 [1] : vector<8x8xf32> to vector<8xf32>
    %27 = vector.shape_cast %26 : vector<8xf32> to vector<8x1xf32>
    %28 = arith.addf %25, %27 : vector<8x1xf32>
    %c0_16 = arith.constant 0 : index
    %c0_17 = arith.constant 0 : index
    %29 = vector.load %arg18[%c0_16, %c0_17] : memref<8x1xf32, #tpu.memory_space<vmem>>, vector<8x1xf32>
    tpu.vector_store %arg18[%c0_16, %c0_17], %28 {strides = array<i32>} : memref<8x1xf32, #tpu.memory_space<vmem>>, vector<8x1xf32>,
    %c0_18 = arith.constant 0 : index
    %c0_19 = arith.constant 0 : index
    %30 = vector.load %arg19[%c0_18, %c0_19] : memref<8x128xf32, #tpu.memory_space<vmem>>, vector<8x128xf32>
    %31 = vector.broadcast %20 : vector<8x1xf32> to vector<8x128xf32>
    %32 = arith.mulf %31, %30 : vector<8x128xf32>
    %33 = arith.truncf %23 : vector<8x8xf32> to vector<8x8xbf16>
    %cst_20 = arith.constant dense<0.000000e+00> : vector<8x128xf32>
    %34 = tpu.matmul %33, %11, %cst_20 {dimension_numbers = #tpu.dot_dimension_numbers<[1], [0], [0], [1], [0, 0, 1, 1], [], []>} : vector<8x8xbf16>, vector<8x128xbf16>, vector<8x128xf32> -> vector<8x128xf32>
    %35 = arith.addf %32, %34 : vector<8x128xf32>
    %c0_21 = arith.constant 0 : index
    %c0_22 = arith.constant 0 : index
    %36 = vector.load %arg19[%c0_21, %c0_22] : memref<8x128xf32, #tpu.memory_space<vmem>>, vector<8x128xf32>
    tpu.vector_store %arg19[%c0_21, %c0_22], %35 {strides = array<i32>} : memref<8x128xf32, #tpu.memory_space<vmem>>, vector<8x128xf32>,
    %c0_23 = arith.constant 0 : index
    %c0_24 = arith.constant 0 : index
    %37 = vector.load %arg17[%c0_23, %c0_24] : memref<8x1xf32, #tpu.memory_space<vmem>>, vector<8x1xf32>
    tpu.vector_store %arg17[%c0_23, %c0_24], %17 {strides = array<i32>} : memref<8x1xf32, #tpu.memory_space<vmem>>, vector<8x1xf32>,
    %c0_i32_25 = arith.constant 0 : i32
    %38 = arith.cmpi eq, %arg2, %c0_i32_25 : i32
    %39 = arith.extui %38 : i1 to i32
    %c0_i32_26 = arith.constant 0 : i32
    %40 = arith.cmpi ne, %39, %c0_i32_26 : i32
    scf.if %40 {
      %c0_27 = arith.constant 0 : index
      %c0_28 = arith.constant 0 : index
      %41 = vector.load %arg19[%c0_27, %c0_28] : memref<8x128xf32, #tpu.memory_space<vmem>>, vector<8x128xf32>
      %c0_29 = arith.constant 0 : index
      %c0_30 = arith.constant 0 : index
      %42 = vector.load %arg18[%c0_29, %c0_30] : memref<8x1xf32, #tpu.memory_space<vmem>>, vector<8x1xf32>
      %43 = tpu.reciprocal %42 : vector<8x1xf32> -> vector<8x1xf32>
      %44 = vector.broadcast %43 : vector<8x1xf32> to vector<8x128xf32>
      %45 = arith.mulf %41, %44 : vector<8x128xf32>
      %46 = arith.truncf %45 : vector<8x128xf32> to vector<8x128xbf16>
      %c0_31 = arith.constant 0 : index
      %c0_32 = arith.constant 0 : index
      %47 = vector.load %arg8[%c0_31, %c0_32] : memref<128x128xbf16, #tpu.memory_space<vmem>>, vector<128x128xbf16>
      %cst_33 = arith.constant dense<0.000000e+00> : vector<8x128xf32>
      %48 = tpu.matmul %46, %47, %cst_33 {dimension_numbers = #tpu.dot_dimension_numbers<[1], [0], [0], [1], [0, 0, 1, 1], [], []>} : vector<8x128xbf16>, vector<128x128xbf16>, vector<8x128xf32> -> vector<8x128xf32>
      %c0_34 = arith.constant 0 : index
      %c0_35 = arith.constant 0 : index
      %49 = vector.load %arg12[%c0_34, %c0_35] : memref<1x128xf32, #tpu.memory_space<vmem>>, vector<1x128xf32>
      %50 = vector.broadcast %49 : vector<1x128xf32> to vector<8x128xf32>
      %51 = arith.addf %48, %50 : vector<8x128xf32>
      %c0_36 = arith.constant 0 : index
      %c0_37 = arith.constant 0 : index
      %c0_38 = arith.constant 0 : index
      %52 = vector.load %arg13[%c0_36, %c0_37, %c0_38] : memref<1x8x128xf32, #tpu.memory_space<vmem>>, vector<1x8x128xf32>
      %53 = vector.shape_cast %52 : vector<1x8x128xf32> to vector<8x128xf32>
      %54 = vector.shape_cast %51 : vector<8x128xf32> to vector<1x8x128xf32>
      tpu.vector_store %arg13[%c0_36, %c0_37, %c0_38], %54 {strides = array<i32>} : memref<1x8x128xf32, #tpu.memory_space<vmem>>, vector<1x8x128xf32>,
    } else {
    }
    return
  }
  func.func @transform_0(%arg0: i32, %arg1: i32, %arg2: i32) -> (i32, i32, i32) {
    %c0_i32 = arith.constant 0 : i32
    %c0_i32_0 = arith.constant 0 : i32
    return %arg0, %arg1, %c0_i32 : i32, i32, i32
  }
  func.func @transform_1(%arg0: i32, %arg1: i32, %arg2: i32) -> (i32, i32, i32) {
    %c0_i32 = arith.constant 0 : i32
    %0 = arith.cmpi eq, %arg1, %c0_i32 : i32
    %c0_i32_0 = arith.constant 0 : i32
    %1 = arith.select %0, %arg2, %c0_i32_0 : i32
    %c0_i32_1 = arith.constant 0 : i32
    %c0_i32_2 = arith.constant 0 : i32
    return %arg0, %1, %c0_i32_1 : i32, i32, i32
  }
  func.func @transform_2(%arg0: i32, %arg1: i32, %arg2: i32) -> (i32, i32) {
    %c0_i32 = arith.constant 0 : i32
    %c0_i32_0 = arith.constant 0 : i32
    %c0_i32_1 = arith.constant 0 : i32
    return %c0_i32, %c0_i32_0 : i32, i32
  }
  func.func @transform_3(%arg0: i32, %arg1: i32, %arg2: i32) -> (i32, i32) {
    %c0_i32 = arith.constant 0 : i32
    %c0_i32_0 = arith.constant 0 : i32
    %c0_i32_1 = arith.constant 0 : i32
    return %c0_i32, %c0_i32_0 : i32, i32
  }
  func.func @transform_4(%arg0: i32, %arg1: i32, %arg2: i32) -> (i32, i32) {
    %c0_i32 = arith.constant 0 : i32
    %c0_i32_0 = arith.constant 0 : i32
    %c0_i32_1 = arith.constant 0 : i32
    return %c0_i32, %c0_i32_0 : i32, i32
  }
  func.func @transform_5(%arg0: i32, %arg1: i32, %arg2: i32) -> (i32, i32) {
    %c0_i32 = arith.constant 0 : i32
    %c0_i32_0 = arith.constant 0 : i32
    %c0_i32_1 = arith.constant 0 : i32
    return %c0_i32, %c0_i32_0 : i32, i32
  }
  func.func @transform_6(%arg0: i32, %arg1: i32, %arg2: i32) -> (i32, i32) {
    %c0_i32 = arith.constant 0 : i32
    %c0_i32_0 = arith.constant 0 : i32
    %c0_i32_1 = arith.constant 0 : i32
    return %c0_i32, %c0_i32_0 : i32, i32
  }
  func.func @transform_7(%arg0: i32, %arg1: i32, %arg2: i32) -> (i32, i32) {
    %c0_i32 = arith.constant 0 : i32
    %c0_i32_0 = arith.constant 0 : i32
    %c0_i32_1 = arith.constant 0 : i32
    return %c0_i32, %c0_i32_0 : i32, i32
  }
  func.func @transform_8(%arg0: i32, %arg1: i32, %arg2: i32) -> (i32, i32) {
    %c0_i32 = arith.constant 0 : i32
    %c0_i32_0 = arith.constant 0 : i32
    %c0_i32_1 = arith.constant 0 : i32
    return %c0_i32, %c0_i32_0 : i32, i32
  }
  func.func @transform_9(%arg0: i32, %arg1: i32, %arg2: i32) -> (i32, i32) {
    %c0_i32 = arith.constant 0 : i32
    %c0_i32_0 = arith.constant 0 : i32
    %c0_i32_1 = arith.constant 0 : i32
    return %c0_i32, %c0_i32_0 : i32, i32
  }
  func.func @transform_10(%arg0: i32, %arg1: i32, %arg2: i32) -> (i32, i32, i32) {
    %c0_i32 = arith.constant 0 : i32
    %c0_i32_0 = arith.constant 0 : i32
    return %arg0, %arg1, %c0_i32 : i32, i32, i32
  }
}

</mosaic_0001>

<bundles_post_ra>
// kernel: tpu_custom_call.1
= control target key start
LH: loop header
LB: loop body
LE: loop exit
PB: predicated region body
PF: predicated region fallthrough
CT: control target
= control target key end

     0   :  { %s2001_s0 = inlined_call_operand.hbm [shape: bf16[2,8,128], index: 0, kind: input, shape index: {}]   ;;  %s2002_s1 = inlined_call_operand.hbm [shape: bf16[2,8,128], index: 1, kind: input, shape index: {}]   ;;  %s2003_s2 = inlined_call_operand.hbm [shape: bf16[128,128], index: 2, kind: input, shape index: {}]   ;;  %s2004_s3 = inlined_call_operand.hbm [shape: bf16[128,128], index: 3, kind: input, shape index: {}]   ;;  %s2005_s4 = inlined_call_operand.hbm [shape: bf16[128,128], index: 4, kind: input, shape index: {}]   ;;  %s2006_s5 = inlined_call_operand.hbm [shape: bf16[128,128], index: 5, kind: input, shape index: {}]   ;;  %s2007_s6 = inlined_call_operand.vmem [shape: f32[1,128], index: 6, kind: input, shape index: {}]   ;;  %s2008_s7 = inlined_call_operand.vmem [shape: f32[1,128], index: 7, kind: input, shape index: {}]   ;;  %s2009_s8 = inlined_call_operand.vmem [shape: f32[1,128], index: 8, kind: input, shape index: {}]   ;;  %s2010_s9 = inlined_call_operand.vmem [shape: f32[1,128], index: 9, kind: input, shape index: {}]   ;;  %s2011_s10 = inlined_call_operand.hbm [shape: f32[2,8,128], index: 10, kind: output, shape index: {}]  }
   0x1   :  { %2017 = sst [smem:[#allocation32_spill]] %s2003_s2 }
   0x2   :  { %2018 = sst [smem:[#allocation33_spill]] %s2004_s3 }
   0x3   :  { %2019 = sst [smem:[#allocation34_spill]] %s2005_s4 }
   0x4   :  { %2020 = sst [smem:[#allocation35_spill]] %s2006_s5 }
   0x5   :  { %2021 = sst [smem:[#allocation36_spill]] %s2010_s9 }
   0x6   :  { %15 = vsyncpa [#allocation9], 0 }
   0x7   :  { %17 = vsyncpa [#allocation9 + $0x1], 0 }
   0x8   :  { %18 = vsyncpa [#allocation12], 0 }
   0x9   :  { %20 = vsyncpa [#allocation12 + $0x1], 0 }
   0xa   :  { %21 = vsyncpa [#allocation15], 0 }
   0xb   :  { %22 = vsyncpa [#allocation18], 0 }
   0xc   :  { %23 = vsyncpa [#allocation10], 0 }
   0xd   :  { %25 = vsyncpa [#allocation10 + $0x1], 0  ;;  %s1794_s13 = smov 0   ;;  %s1796_s14 = smov 0  }
   0xe   :  { %s1798_s15 = smov 0   ;;  %s1800_s16 = smov 0  }
   0xf   :  { %s1802_s17 = smov 0   ;;  %s1804_s18 = smov 0  }
  0x10 LB: > { %2022 = sst [smem:[#allocation26_spill]] %s1708_s13  ;;  %s1825_s19 = sadd.s32 4294967295, %s1728_s18   ;;  %s1728_s18 = sphi %s1804_s18, %s31_s18   ;;  %s1724_s17 = sphi %s1802_s17, %s2044_s17   ;;  %s1720_s16 = sphi %s1800_s16, %s2043_s16   ;;  %s1716_s15 = sphi %s1798_s15, %s2042_s15   ;;  %s1712_s14 = sphi %s1796_s14, %s2046_s14   ;;  %s1708_s13 = sphi %s1794_s13, %s2045_s13  }
  0x11   : > { %2023 = sst [smem:[#allocation27_spill]] %s1716_s15  ;;  %p1141_p0 = scmp.ge.s32.totalorder %s1728_s18, 1 }
  0x12   : > { %2024 = sst [smem:[#allocation28_spill]] %s1724_s17  ;;  %p73_p1 = scmp.eq.s32.totalorder %s1825_s19, 0 }
  0x13   : > { %p311_p2 = scmp.lt.s32.totalorder %s1728_s18, 3  ;;  %s2025_s2 = sld [smem:[#allocation32_spill]] }
  0x14   : > { %s1730_s24 = smov [#allocation13]   ;;  %p1146_p6 = scmp.ge.s32.totalorder %s1728_s18, 2 }
  0x15   : > { %p1833_p3 = pnand %p1141_p0, %p311_p2  ;;  %s324_s25 = sshll.u32 %s1730_s24, 4  ;;  %s325_s25 = int_to_ptr.vmem [resolvable:$true] %s324_s25 }
  0x16   : > { %s2028_s3 = sld [smem:[#allocation33_spill]]  ;;  %s1731_s30 = smov 64  }
  0x17   : > { %p1346_p4 = pneg %p1833_p3  ;;  %s1732_s11 = smov 4  }
  0x18   : > { %s1733_s12 = smov [#allocation14]   ;;  %s2029_s4 = sld [smem:[#allocation34_spill]] }
  0x19   : > { %s322_s22 = sshll.u32 %s2025_s2, 4  ;;  %p1841_p5 = pnand %p1346_p4, %p73_p1  ;;  %s323_s22 = int_to_ptr.hbm [resolvable:$true] %s322_s22 }
  0x1a   : > { %s338_s20 = sshll.u32 %s1733_s12, 4  ;;  %s2030_s5 = sld [smem:[#allocation35_spill]]  ;;  %s339_s20 = int_to_ptr.vmem [resolvable:$true] %s338_s20 }
  0x1b   : > { %1349 = dma.hbm_to_vmem [thread:$0]  (!%p1841_p5), %s323_s22, 1024, %s325_s25, [#allocation12], %s1731_s30, %s1731_s30, %s1732_s11  }
  0x1c   : > { %s336_s29 = sshll.u32 %s2028_s3, 4  ;;  %s1734_s25 = smov [#allocation16]   ;;  %s337_s29 = int_to_ptr.hbm [resolvable:$true] %s336_s29 }
  0x1d   : > { %1352 = dma.hbm_to_vmem [thread:$0]  (!%p1841_p5), %s337_s29, 1024, %s339_s20, [#allocation15], %s1731_s30, %s1731_s30, %s1732_s11  }
  0x1e   : > { %s350_s2 = sshll.u32 %s2029_s4, 4  ;;  %s352_s3 = sshll.u32 %s1734_s25, 4  ;;  %s351_s2 = int_to_ptr.hbm [resolvable:$true] %s350_s2  ;;  %s353_s3 = int_to_ptr.vmem [resolvable:$true] %s352_s3 }
  0x1f   : > { %1355 = dma.hbm_to_vmem [thread:$0]  (!%p1841_p5), %s351_s2, 1024, %s353_s3, [#allocation15], %s1731_s30, %s1731_s30, %s1732_s11  }
  0x20   : > { %s364_s22 = sshll.u32 %s2030_s5, 4  ;;  %s1735_s12 = smov [#allocation17]   ;;  %s365_s22 = int_to_ptr.hbm [resolvable:$true] %s364_s22 }
  0x21   : > { %s366_s21 = sshll.u32 %s1735_s12, 4  ;;  %s1140_s29 = sadd.s32 4294967294, %s1728_s18   ;;  %s367_s21 = int_to_ptr.vmem [resolvable:$true] %s366_s21 }
  0x22   : > { %1358 = dma.hbm_to_vmem [thread:$0]  (!%p1841_p5), %s365_s22, 1024, %s367_s21, [#allocation18], %s1731_s30, %s1731_s30, %s1732_s11  }
  0x23   : > { %s50_s20 = sadd.s32 1, %s1724_s17  ;;  %s59_s24 = sadd.s32 1, %s1716_s15 }
  0x24   : > { %p52_p7 = scmp.ge.s32.totalorder %s50_s20, 2  ;;  %p66_p8 = scmp.ne.s32.totalorder %s1716_s15, %s1712_s14 }
  0x25   : > { %p67_p9 = scmp.eq.s32.totalorder %s1728_s18, 0  ;;  %p72_p11 = scmp.ne.s32.totalorder %s1712_s14, %s1708_s13 }
  0x26   : > { %s2048_s20 = smov (%p52_p7, %s50_s20), 0  ;;  %p298_p12 = scmp.eq.s32.totalorder %s1825_s19, 1 }
  0x27   : > { %2031 = sst [smem:[#allocation29_spill]] %s2048_s20  ;;  %p1871_p10 = por %p67_p9, %p66_p8 }
  0x28   : > { %s54_s3 = ssub.s32 %s1724_s17, %s2048_s20  ;;  %p1882_p0 = por %p73_p1, %p72_p11 }
  0x29   : > { %p57_p13 = scmp.eq.s32.totalorder %s54_s3, 0  ;;  %p1886_p2 = por %p298_p12, %p66_p8 }
  0x2a   : > { %p304_p4 = scmp.eq.s32.totalorder %s1140_s29, 1  ;;  %p1374_p7 = scmp.lt.s32.totalorder %s1728_s18, 2 }
  0x2b   : > { %s1891_s11 = scalar_select %p57_p13, %s1716_s15, %s59_s24  }
  0x2c   : > { %p1893_p5 = por %p304_p4, %p72_p11  ;;  %s392_s28 = sand.u32 1, %s1716_s15  }
  0x2d   : > { %2035 = sst [smem:[#allocation30_spill]] %s1891_s11  ;;  %s1148_s22 = sshll.u32 %s1724_s17, 2 }
  0x2e   : > { %s2036_s27 = scalar_select %p1893_p5, 1, 0 }
  0x2f   : > { %s1147_s25 = sshll.u32 %s392_s28, 2  ;;  %s401_s3 = scalar_lea.hbm %s2001_s0, %s1148_s22 }
  0x30   : > { %2037 = sst [smem:[#allocation31_spill]] %s2036_s27  ;;  %s403_s4 = sshll.u32 %s401_s3, 4  ;;  %s404_s4 = int_to_ptr.hbm [resolvable:$true] %s403_s4 }
  0x31   : > { %s396_s5 = scalar_lea.vmem [#allocation8], %s1147_s25  ;;  %p1360_p8 = pnand %p1374_p7, %p1871_p10 }
  0x32   : > { %s405_s20 = sshll.u32 %s396_s5, 4  ;;  %s423_s11 = scalar_lea.hbm %s2002_s1, %s1148_s22  ;;  %s406_s20 = int_to_ptr.vmem [resolvable:$true] %s405_s20 }
  0x33   : > { %s412_s27 = sand.u32 1, %s1728_s18   ;;  %s393_s13 = scalar_lea.sflag [#allocation9], %s392_s28 }
  0x34   : > { %1362 = dma.hbm_to_vmem [thread:$0]  (!%p1360_p8), %s404_s4, 64, %s406_s20, %s393_s13  }
  0x35   : > { %s425_s17 = sshll.u32 %s423_s11, 4  ;;  %s416_s15 = scalar_lea.vmem [#allocation11], %s1147_s25  ;;  %s426_s17 = int_to_ptr.hbm [resolvable:$true] %s425_s17 }
  0x36   : > { %s427_s9 = sshll.u32 %s416_s15, 4  ;;  %s413_s12 = scalar_lea.sflag [#allocation12], %s412_s27  ;;  %s428_s9 = int_to_ptr.vmem [resolvable:$true] %s427_s9 }
  0x37   : > { %1365 = dma.hbm_to_vmem [thread:$0]  (!%p1360_p8), %s426_s17, 64, %s428_s9, %s413_s12  }
  0x38   : > { %436 = sbr.rel (%p1833_p3) target bundleno = 998 (0x3e6), region = 60  ;;  %s1912_s5 = sand.u32 (!%p1833_p3), 1, %s1712_s14  }
  0x39   : > { %s1152_s2 = sshll.u32 (!%p1833_p3), %s1912_s5, 2  ;;  %s439_s22 = scalar_lea.sflag (!%p1833_p3), [#allocation9], %s1912_s5 }
  0x3a   : > { %s1916_s28 = scalar_lea.vmem (!%p1833_p3), [#allocation8], %s1152_s2 }
  0x3d   : > { %1683 = dma.done.wait (%p1882_p0), %s439_s22, 64  }
  0x3e   : > { %1685 = vsyncadd (%p1882_p0), %s439_s22, 4294967232  ;;  %s448_s4 = sand.u32 1, %s1825_s19   ;;  %s1923_s13 = scalar_lea.vmem [#allocation11], %s1152_s2 }
  0x3f   : > { %s449_s9 = scalar_lea.sflag [#allocation12], %s448_s4 }
  0x40   : > { %1687 = dma.done.wait (%p1882_p0), %s449_s9, 64  }
  0x41   : > { %1689 = vsyncadd (%p1882_p0), %s449_s9, 4294967232 }
  0x42   : > { %1691 = dma.done.wait (%p73_p1), [#allocation12], 1024  }
  0x43   : > { %1693 = vsyncadd (%p73_p1), [#allocation12], 4294966272 }
  0x44   : > { %1695 = dma.done.wait (%p73_p1), [#allocation15], 2048  }
  0x45   : > { %1697 = vsyncadd (%p73_p1), [#allocation15], 4294965248 }
  0x46   : > { %1699 = dma.done.wait (%p73_p1), [#allocation18], 1024  }
  0x47   : > { %1701 = vsyncadd (%p73_p1), [#allocation18], 4294966272  ;;  %v1299_v0 = vld [vmem:[#allocation14 + $0x38] sm:$0xff]  ;;  %v1298_v2 = vld [vmem:[#allocation14 + $0x30] sm:$0xff]  ;;  %vm781_vm0 = vcmask 7168   ;;  %v1736_v32 = vmov -inf  }
  0x48   : > { %v1315_v1 = vld [vmem:[#allocation13 + $0x38] sm:$0xff]  ;;  %591 = vmatpush.bf16.msra.mxu0 %v1299_v0  ;;  %v1314_v3 = vld [vmem:[#allocation13 + $0x30] sm:$0xff]  ;;  %v1297_v4 = vld [vmem:[#allocation14 + $0x28] sm:$0xff]  ;;  %782 = vst.msk [vmem:[#allocation5] sm:$0xff] %vm781_vm0, %v1736_v32  ;;  %vm806_vm1 = vcmask 64512   ;;  %v1737_v42 = vmov 0  }
  0x49   : > { %766 = vmatpush.bf16.msra.mxu2 %v1315_v1  ;;  %v1313_v5 = vld [vmem:[#allocation13 + $0x28] sm:$0xff]  ;;  %v1296_v6 = vld [vmem:[#allocation14 + $0x20] sm:$0xff]  ;;  %v1295_v8 = vld [vmem:[#allocation14 + $0x18] sm:$0xff]  ;;  %1437 = vset.pattern.permute.xlu0 %v1737_v42  ;;  %v1738_v43 = vmov 0.0   ;;  %vm841_vm2 = vcmask 1043456   ;;  %s1289_s11 = sshll.u32 %s1720_s16, 3 }
  0x4a   : > { %v1312_v7 = vld [vmem:[#allocation13 + $0x20] sm:$0xff]  ;;  %v1311_v9 = vld [vmem:[#allocation13 + $0x18] sm:$0xff]  ;;  %v1294_v10 = vld [vmem:[#allocation14 + $0x10] sm:$0xff]  ;;  %1438 = vset.pattern.permute.xlu1 %v1737_v42  ;;  %1439 = vset.pattern.permute.xlu2 %v1737_v42  ;;  %783 = vst.msk [vmem:[#allocation6] sm:$0xff] %vm781_vm0, %v1738_v43  ;;  %s1158_s27 = sshll.u32 %s1912_s5, 3  ;;  %s981_s3 = scalar_lea.hbm %s2011_s10, %s1289_s11 }
  0x4b   : > { %v1310_v11 = vld [vmem:[#allocation13 + $0x10] sm:$0xff]  ;;  %v1293_v12 = vld [vmem:[#allocation14 + $0x8] sm:$0xff]  ;;  %v1292_v14 = vld [vmem:[#allocation14] sm:$0xff]  ;;  %s2038_s12 = sld [smem:[#allocation36_spill]]  ;;  %s514_s2 = scalar_lea.vmem [#allocation19], %s1158_s27 }
  0x4c   : > { %592 = vmatpush.bf16.msra.mxu0 %v1298_v2  ;;  %v1309_v13 = vld [vmem:[#allocation13 + $0x8] sm:$0xff]  ;;  %v1308_v15 = vld [vmem:[#allocation13] sm:$0xff]  ;;  %v522_v16 = vld [vmem:[%s1923_s13] sm:$0xf]  ;;  %s983_s22 = sshll.u32 %s514_s2, 4  ;;  %s970_s4 = scalar_lea.sflag [#allocation10], %s1912_s5  ;;  %s984_s22 = int_to_ptr.vmem [resolvable:$true] %s983_s22 }
  0x4d   : > { %767 = vmatpush.bf16.msra.mxu2 %v1314_v3  ;;  %v697_v17 = vld [vmem:[%s1916_s28] sm:$0xf]  ;;  %v1307_v30 = vld [vmem:[#allocation16 + $0x38] sm:$0xff]  ;;  %v1305_v33 = vld [vmem:[#allocation16 + $0x28] sm:$0xff]  ;;  %s985_s28 = sshll.u32 %s981_s3, 4  ;;  %s1650_s17 = scalar_lea.hbm %s2011_s10, 16  ;;  %s986_s28 = int_to_ptr.hbm [resolvable:$true] %s985_s28 }
  0x4e   : > { %v1440_v18 = vld [vmem:[%s2008_s7] ss:$0 sm:$0xff]  ;;  %672 = vmatpush.bf16.msra.mxu1 %v1307_v30  ;;  %v1304_v34 = vld [vmem:[#allocation16 + $0x20] sm:$0xff]  ;;  %v1303_v35 = vld [vmem:[#allocation16 + $0x18] sm:$0xff]  ;;  %s1644_s16 = sshra.s32 %s986_s28, 4  ;;  %s1645_s16 = int_to_ptr.hbm [resolvable:$true] %s1644_s16 }
  0x4f   : > { %v1441_v22 = vld [vmem:[%s2007_s6] ss:$0 sm:$0xff]  ;;  %v1301_v37 = vld [vmem:[#allocation16 + $0x8] sm:$0xff]  ;;  %v1300_v40 = vld [vmem:[#allocation16] sm:$0xff]  ;;  %s1646_s9 = scalar_lea.hbm %s1645_s16, 8  ;;  %p1651_p10 = scmp.lt.s32.totalorder %s1645_s16, %s2011_s10 }
  0x50   : > { %593 = vmatpush.bf16.msra.mxu0 %v1297_v4  ;;  %v1306_v31 = vld [vmem:[#allocation16 + $0x30] sm:$0xff]  ;;  %v805_v44 = vld [vmem:[#allocation5] sm:$0xff]  ;;  %v1323_v0 = vld [vmem:[#allocation17 + $0x38] sm:$0xff]  ;;  %p1647_p1 = scmp.ne.s32.totalorder %s1645_s16, %s1646_s9  ;;  %p1652_p11 = scmp.lt.s32.totalorder %s1650_s17, %s1646_s9 }
  0x51   : > { %768 = vmatpush.bf16.msra.mxu2 %v1313_v5  ;;  %v1302_v36 = vld [vmem:[#allocation16 + $0x10] sm:$0xff]  ;;  %v822_v63 = vld [vmem:[#allocation6] sm:$0xff] }
  0x52   : > { %673 = vmatpush.bf16.msra.mxu1 %v1306_v31  ;;  %v1442_v48 = vld [vmem:[%s2009_s8] ss:$0 sm:$0xff]  ;;  %v1321_v5 = vld [vmem:[#allocation17 + $0x28] sm:$0xff]  ;;  %p1648_p3 = pnand %p1647_p1, %p1886_p2  ;;  %p1653_p12 = por %p1652_p11, %p1651_p10 }
  0x53   : > { %v1322_v1 = vld [vmem:[#allocation17 + $0x30] sm:$0xff] }
  0x54   : > { %594 = vmatpush.bf16.msra.mxu0 %v1296_v6  ;;  %v1320_v6 = vld [vmem:[#allocation17 + $0x20] sm:$0xff]  ;;  %v1443_v30 = vld [vmem:[%s2038_s12] ss:$0 sm:$0xff]  ;;  %p1649_p9 = pneg %p1648_p3 }
  0x55   : > { %769 = vmatpush.bf16.msra.mxu2 %v1312_v7 }
  0x56   : > { %674 = vmatpush.bf16.msra.mxu1 %v1305_v33  ;;  %p1654_p13 = pnand %p1653_p12, %p1649_p9 }
  0x58   : > { %595 = vmatpush.bf16.msra.mxu0 %v1295_v8  ;;  %v1319_v8 = vld [vmem:[#allocation17 + $0x18] sm:$0xff] }
  0x59   : > { %770 = vmatpush.bf16.msra.mxu2 %v1311_v9  ;;  %v1318_v9 = vld [vmem:[#allocation17 + $0x10] sm:$0xff] }
  0x5a   : > { %675 = vmatpush.bf16.msra.mxu1 %v1304_v34 }
  0x5c   : > { %596 = vmatpush.bf16.msra.mxu0 %v1294_v10 }
  0x5d   : > { %771 = vmatpush.bf16.msra.mxu2 %v1310_v11 }
  0x5e   : > { %676 = vmatpush.bf16.msra.mxu1 %v1303_v35 }
  0x60   : > { %597 = vmatpush.bf16.msra.mxu0 %v1293_v12 }
  0x61   : > { %772 = vmatpush.bf16.msra.mxu2 %v1309_v13  ;;  %v1317_v13 = vld [vmem:[#allocation17 + $0x8] sm:$0xff] }
  0x62   : > { %677 = vmatpush.bf16.msra.mxu1 %v1302_v36 }
  0x64   : > { %598 = vmatpush.bf16.msra.mxu0 %v1292_v14 }
  0x65   : > { %773 = vmatpush.bf16.msra.mxu2 %v1308_v15 }
  0x66   : > { %678 = vmatpush.bf16.msra.mxu1 %v1301_v37 }
  0x67   : > { %599 = vmatmul.bf16.vlgmr.msra.gmra.mxu0 %v522_v16 }
  0x68   : > { %774 = vmatmul.bf16.vlgmr.msra.gmra.mxu2 %v697_v17 }
  0x6a   : > { %679 = vmatpush.bf16.msra.mxu1 %v1300_v40 }
  0x6d   : > { %680 = vmatmul.bf16.vlgmr.msra.gmra.mxu1 %v522_v16 }
  0xe4   : > { %v600_v19 = vpop.f32.mrf.mxu0 }
  0xe5   : > { %v601_v20 = vadd.f32 %v1440_v18, %v600_v19 }
  0xe7   : > { %v685_v21 = vpack.c.bf16 %v601_v20, %v601_v20 }
  0xe9   : > { %688 = vst [vmem:[#allocation3] sm:$0xf] %v685_v21 }
  0xea   : > { %v681_v49 = vpop.f32.mrf.mxu1 }
  0xeb   : > { %v775_v23 = vpop.f32.mrf.mxu2  ;;  %v682_v50 = vadd.f32 %v1442_v48, %v681_v49 }
  0xec   : > { %v776_v24 = vadd.f32 %v1441_v22, %v775_v23  ;;  %v602_v25 = vpop.f32.mrf.mxu0  ;;  %v1316_v23 = vld [vmem:[#allocation17] sm:$0xff] }
  0xed   : > { %v689_v51 = vpack.c.bf16 %v682_v50, %v682_v50 }
  0xee   : > { %v779_v26 = vpack.c.bf16 %v776_v24, %v776_v24 }
  0xef   : > { %692 = vst [vmem:[#allocation4] sm:$0xf] %v689_v51 }
  0xf0   : > { %780 = vst [vmem:[#allocation2] sm:$0xf] %v779_v26  ;;  %v787_v27 = vld [vmem:[#allocation3] sm:$0xf] }
  0xf1   : > { %799 = vmatpush.bf16.xpose.msrb.mxu0 %v787_v27 }
  0xf2   : > { %v683_v52 = vpop.f32.mrf.mxu1 }
  0xf3   : > { %v777_v28 = vpop.f32.mrf.mxu2 }
  0xf6   : > { %v790_v53 = vld [vmem:[#allocation4] sm:$0xf] }
  0xf7   : > { %v791_v29 = vld [vmem:[#allocation2] sm:$0xf]  ;;  %v843_v54 = vsel %vm841_vm2, %v790_v53, 0 }
  0xf8   : > { %800 = vmatmul.bf16.vlgmr.msrb.gmra.mxu0 %v791_v29  ;;  %852 = vmatpush.bf16.msra.mxu3 %v843_v54 }
  0xfc   : > { %955 = vmatpush.bf16.msrb.mxu3 %v1323_v0 }
 0x100   : > { %956 = vmatpush.bf16.msrb.mxu3 %v1322_v1 }
 0x104   : > { %957 = vmatpush.bf16.msrb.mxu3 %v1321_v5 }
 0x108   : > { %958 = vmatpush.bf16.msrb.mxu3 %v1320_v6 }
 0x10c   : > { %959 = vmatpush.bf16.msrb.mxu3 %v1319_v8 }
 0x110   : > { %960 = vmatpush.bf16.msrb.mxu3 %v1318_v9 }
 0x114   : > { %961 = vmatpush.bf16.msrb.mxu3 %v1317_v13 }
 0x118   : > { %962 = vmatpush.bf16.msrb.mxu3 %v1316_v23 }
 0x175   : > { %v801_v38 = vpop.f32.mrf.mxu0 }
 0x176   : > { %v807_v39 = vsel %vm806_vm1, %v801_v38, -inf }
 0x177   : > { %808 = vmax.xlane.f32.xlu0 %v807_v39 }
 0x17d   : > { %v803_v41 = vpop.f32.mrf.mxu0 }
 0x1ea   : > { %v809_v45 = vpop.xlane.xlu0 %808 }
 0x1eb   : > { %v810_v46 = vmax.f32 %v805_v44, %v809_v45 }
 0x1ed   : > { %v811_v47 = vsub.f32 %v805_v44, %v810_v46  ;;  %860 = vst.msk [vmem:[#allocation5] sm:$0xff] %vm781_vm0, %v810_v46  ;;  %816 = vperm.xlu0 %1437, %v810_v46  }
 0x1ef   : > { %v812_v61 = vmul.f32 1.442695, %v811_v47 }
 0x25f   : > { %v817_v55 = vpop.permute.xlu0 %816 }
 0x260   : > { %v819_v56 = vsub.f32 %v801_v38, %v817_v55 }
 0x262   : > { %v820_v57 = vmul.f32 1.442695, %v819_v56 }
 0x264   : > { %1444 = vpow2.f32 %v820_v57 }
 0x265   : > { %1446 = vpow2.f32 %v812_v61 }
 0x26a   : > { %v1445_v58 = vpop.eup %1444 }
 0x26b   : > { %v824_v59 = vsel %vm806_vm1, %v1445_v58, 0.0  ;;  %v837_v60 = vpack.c.bf16 %v1445_v58, %v1445_v58  ;;  %v1447_v62 = vpop.eup %1446 }
 0x26c   : > { %825 = vadd.xlane.f32.xlu1 %v824_v59  ;;  %v823_v2 = vmul.f32 %v1447_v62, %v822_v63 }
 0x26d   : > { %1255 = vmatmul.msk.bf16.vlgmr.msra.gmra.mxu3 %vm806_vm1, %v837_v60 }
 0x285   : > { %833 = vperm.xlu1 %1438, %v1447_v62  }
 0x2df   : > { %v826_v3 = vpop.xlane.xlu1 %825 }
 0x2e0   : > { %v827_v4 = vadd.f32 %v826_v3, %v823_v2 }
 0x2e2   : > { %829 = vst.msk [vmem:[#allocation6] sm:$0xff] %vm781_vm0, %v827_v4 }
 0x2e9   : > { %v865_v7 = vld [vmem:[#allocation6] sm:$0xff] }
 0x2ea   : > { %1448 = vrcp.f32 %v865_v7  ;;  %v877_v15 = vand.u32 2147483648, %v865_v7  ;;  %v875_v17 = vand.u32 2147483647, %v865_v7  ;;  %vm871_vm4 = vweird.f32 %v865_v7 }
 0x2ec   : > { %v878_v20 = vor.u32 1.1754944e-38, %v877_v15  ;;  %vm876_vm6 = vcmp.eq.f32.partialorder %v875_v17, 8.507059e+37 }
 0x2f0   : > { %v1449_v10 = vpop.eup %1448  ;;  %v854_v11 = vpop.f32.mrf.mxu3 }
 0x2f1   : > { %v867_v12 = vmul.f32 %v1449_v10, %v865_v7  ;;  %vm872_vm3 = vweird.f32 %v1449_v10 }
 0x2f2   : > { %vm873_vm5 = vmor %vm871_vm4, %vm872_vm3 }
 0x2f3   : > { %v868_v14 = vsub.f32 1.0, %v867_v12 }
 0x2f5   : > { %v869_v16 = vmul.f32 %v1449_v10, %v868_v14 }
 0x2f7   : > { %v870_v18 = vadd.f32 %v1449_v10, %v869_v16  ;;  %v834_v24 = vpop.permute.xlu1 %833 }
 0x2f8   : > { %v856_v19 = vpop.f32.mrf.mxu3  ;;  %v836_v25 = vmul.f32 0.0, %v834_v24 }
 0x2f9   : > { %v874_v21 = vsel %vm873_vm5, %v1449_v10, %v870_v18 }
 0x2fa   : > { %v879_v22 = vsel %vm876_vm6, %v878_v20, %v874_v21  ;;  %v858_v26 = vadd.f32 %v854_v11, %v836_v25 }
 0x2fb   : > { %882 = vperm.xlu2 %1439, %v879_v22  }
 0x355   : > { %v883_v27 = vpop.permute.xlu2 %882 }
 0x356   : > { %v885_v28 = vmul.f32 %v883_v27, %v858_v26 }
 0x358   : > { %v886_v29 = vpack.c.bf16 %v885_v28, %v885_v28 }
 0x35a   : > { %963 = vmatmul.bf16.vlgmr.msrb.gmra.mxu3 %v886_v29 }
 0x3dd   : > { %v964_v31 = vpop.f32.mrf.mxu3 }
 0x3de   : > { %v965_v32 = vadd.f32 %v1443_v30, %v964_v31 }
 0x3e0   : > { %968 = vst [vmem:[%s514_s2] sm:$0xff] %v965_v32 }
 0x3e1   : > { %1657 = shalt.err (!%p1654_p13)
}
 0x3e2   : > { %1344 = dma.vmem_to_hbm [thread:$0]  (%p1886_p2), %s984_s22, 128, %s986_s28, %s970_s4  }
 0x3e5   : > { %v966_v33 = vpop.f32.mrf.mxu3 }
 0x3e6 PF: > { %s2039_s5 = sld [smem:[#allocation26_spill]]  ;;  %p1367_p0 = pnand %p1146_p6, %p1893_p5 }
 0x3e8   : > { %p1368_p4 = pneg %p1367_p0 }
 0x3ec   : > { %s997_s26 = sand.u32 1, %s2039_s5  }
 0x3ed   : > { %s998_s11 = scalar_lea.sflag [#allocation10], %s997_s26 }
 0x3ee   : > { %1703 = dma.done.wait (%p1368_p4), %s998_s11, 128  }
 0x3ef   : > { %1705 = vsyncadd (%p1368_p4), %s998_s11, 4294967168  ;;  %s31_s18 = sadd.s32 1, %s1728_s18   ;;  %s2041_s27 = sld [smem:[#allocation27_spill]] }
 0x3f0   : > { %p28_p7 = scmp.ge.s32.totalorder %s31_s18, 4   ;;  %s2042_s15 = sld [smem:[#allocation30_spill]] }
 0x3f1   : > { %s2043_s16 = sld [smem:[#allocation28_spill]]  ;;  %s2045_s13 = smov %s1712_s14 }
 0x3f2   : > { %s2044_s17 = sld [smem:[#allocation29_spill]]  ;;  %30 = sbr.rel (!%p28_p7) target bundleno = 16 (0x10), region = 150 }
 0x3f5   : > { %s2046_s14 = smov %s2041_s27 }
 0x3f7   :  { %1004 = vsyncpa [#allocation9], 1 }
 0x3f8   :  { %1006 = vsyncpa [#allocation9 + $0x1], 1 }
 0x3f9   :  { %1007 = vsyncpa [#allocation12], 1 }
 0x3fa   :  { %1009 = vsyncpa [#allocation12 + $0x1], 1 }
 0x3fb   :  { %1010 = vsyncpa [#allocation15], 1 }
 0x3fc   :  { %1011 = vsyncpa [#allocation18], 1 }
 0x3fd   :  { %1012 = vsyncpa [#allocation10], 1 }
 0x3fe   :  { %1014 = vsyncpa [#allocation10 + $0x1], 1 }

// kernel: tpu_custom_call.1
= control target key start
LH: loop header
LB: loop body
LE: loop exit
PB: predicated region body
PF: predicated region fallthrough
CT: control target
= control target key end

     0   :  { %s2001_s0 = inlined_call_operand.hbm [shape: bf16[2,8,128], index: 0, kind: input, shape index: {}]   ;;  %s2002_s1 = inlined_call_operand.hbm [shape: bf16[2,8,128], index: 1, kind: input, shape index: {}]   ;;  %s2003_s2 = inlined_call_operand.hbm [shape: bf16[128,128], index: 2, kind: input, shape index: {}]   ;;  %s2004_s3 = inlined_call_operand.hbm [shape: bf16[128,128], index: 3, kind: input, shape index: {}]   ;;  %s2005_s4 = inlined_call_operand.hbm [shape: bf16[128,128], index: 4, kind: input, shape index: {}]   ;;  %s2006_s5 = inlined_call_operand.hbm [shape: bf16[128,128], index: 5, kind: input, shape index: {}]   ;;  %s2007_s6 = inlined_call_operand.vmem [shape: f32[1,128], index: 6, kind: input, shape index: {}]   ;;  %s2008_s7 = inlined_call_operand.vmem [shape: f32[1,128], index: 7, kind: input, shape index: {}]   ;;  %s2009_s8 = inlined_call_operand.vmem [shape: f32[1,128], index: 8, kind: input, shape index: {}]   ;;  %s2010_s9 = inlined_call_operand.vmem [shape: f32[1,128], index: 9, kind: input, shape index: {}]   ;;  %s2011_s10 = inlined_call_operand.hbm [shape: f32[2,8,128], index: 10, kind: output, shape index: {}]  }
   0x1   :  { %2017 = sst [smem:[#allocation32_spill]] %s2003_s2 }
   0x2   :  { %2018 = sst [smem:[#allocation33_spill]] %s2004_s3 }
   0x3   :  { %2019 = sst [smem:[#allocation34_spill]] %s2005_s4 }
   0x4   :  { %2020 = sst [smem:[#allocation35_spill]] %s2006_s5 }
   0x5   :  { %2021 = sst [smem:[#allocation36_spill]] %s2010_s9 }
   0x6   :  { %15 = vsyncpa [#allocation9], 0 }
   0x7   :  { %17 = vsyncpa [#allocation9 + $0x1], 0 }
   0x8   :  { %18 = vsyncpa [#allocation12], 0 }
   0x9   :  { %20 = vsyncpa [#allocation12 + $0x1], 0 }
   0xa   :  { %21 = vsyncpa [#allocation15], 0 }
   0xb   :  { %22 = vsyncpa [#allocation18], 0 }
   0xc   :  { %23 = vsyncpa [#allocation10], 0 }
   0xd   :  { %25 = vsyncpa [#allocation10 + $0x1], 0  ;;  %s1794_s13 = smov 0   ;;  %s1796_s14 = smov 0  }
   0xe   :  { %s1798_s15 = smov 0   ;;  %s1800_s16 = smov 0  }
   0xf   :  { %s1802_s17 = smov 0   ;;  %s1804_s18 = smov 0  }
  0x10 LB: > { %2022 = sst [smem:[#allocation26_spill]] %s1708_s13  ;;  %s1825_s19 = sadd.s32 4294967295, %s1728_s18   ;;  %s1728_s18 = sphi %s1804_s18, %s31_s18   ;;  %s1724_s17 = sphi %s1802_s17, %s2044_s17   ;;  %s1720_s16 = sphi %s1800_s16, %s2043_s16   ;;  %s1716_s15 = sphi %s1798_s15, %s2042_s15   ;;  %s1712_s14 = sphi %s1796_s14, %s2046_s14   ;;  %s1708_s13 = sphi %s1794_s13, %s2045_s13  }
  0x11   : > { %2023 = sst [smem:[#allocation27_spill]] %s1716_s15  ;;  %p1141_p0 = scmp.ge.s32.totalorder %s1728_s18, 1 }
  0x12   : > { %2024 = sst [smem:[#allocation28_spill]] %s1724_s17  ;;  %p73_p1 = scmp.eq.s32.totalorder %s1825_s19, 0 }
  0x13   : > { %p311_p2 = scmp.lt.s32.totalorder %s1728_s18, 3  ;;  %s2025_s2 = sld [smem:[#allocation32_spill]] }
  0x14   : > { %s1730_s24 = smov [#allocation13]   ;;  %p1146_p6 = scmp.ge.s32.totalorder %s1728_s18, 2 }
  0x15   : > { %p1833_p3 = pnand %p1141_p0, %p311_p2  ;;  %s324_s25 = sshll.u32 %s1730_s24, 4  ;;  %s325_s25 = int_to_ptr.vmem [resolvable:$true] %s324_s25 }
  0x16   : > { %s2028_s3 = sld [smem:[#allocation33_spill]]  ;;  %s1731_s30 = smov 64  }
  0x17   : > { %p1346_p4 = pneg %p1833_p3  ;;  %s1732_s11 = smov 4  }
  0x18   : > { %s1733_s12 = smov [#allocation14]   ;;  %s2029_s4 = sld [smem:[#allocation34_spill]] }
  0x19   : > { %s322_s22 = sshll.u32 %s2025_s2, 4  ;;  %p1841_p5 = pnand %p1346_p4, %p73_p1  ;;  %s323_s22 = int_to_ptr.hbm [resolvable:$true] %s322_s22 }
  0x1a   : > { %s338_s20 = sshll.u32 %s1733_s12, 4  ;;  %s2030_s5 = sld [smem:[#allocation35_spill]]  ;;  %s339_s20 = int_to_ptr.vmem [resolvable:$true] %s338_s20 }
  0x1b   : > { %1349 = dma.hbm_to_vmem [thread:$0]  (!%p1841_p5), %s323_s22, 1024, %s325_s25, [#allocation12], %s1731_s30, %s1731_s30, %s1732_s11  }
  0x1c   : > { %s336_s29 = sshll.u32 %s2028_s3, 4  ;;  %s1734_s25 = smov [#allocation16]   ;;  %s337_s29 = int_to_ptr.hbm [resolvable:$true] %s336_s29 }
  0x1d   : > { %1352 = dma.hbm_to_vmem [thread:$0]  (!%p1841_p5), %s337_s29, 1024, %s339_s20, [#allocation15], %s1731_s30, %s1731_s30, %s1732_s11  }
  0x1e   : > { %s350_s2 = sshll.u32 %s2029_s4, 4  ;;  %s352_s3 = sshll.u32 %s1734_s25, 4  ;;  %s351_s2 = int_to_ptr.hbm [resolvable:$true] %s350_s2  ;;  %s353_s3 = int_to_ptr.vmem [resolvable:$true] %s352_s3 }
  0x1f   : > { %1355 = dma.hbm_to_vmem [thread:$0]  (!%p1841_p5), %s351_s2, 1024, %s353_s3, [#allocation15], %s1731_s30, %s1731_s30, %s1732_s11  }
  0x20   : > { %s364_s22 = sshll.u32 %s2030_s5, 4  ;;  %s1735_s12 = smov [#allocation17]   ;;  %s365_s22 = int_to_ptr.hbm [resolvable:$true] %s364_s22 }
  0x21   : > { %s366_s21 = sshll.u32 %s1735_s12, 4  ;;  %s1140_s29 = sadd.s32 4294967294, %s1728_s18   ;;  %s367_s21 = int_to_ptr.vmem [resolvable:$true] %s366_s21 }
  0x22   : > { %1358 = dma.hbm_to_vmem [thread:$0]  (!%p1841_p5), %s365_s22, 1024, %s367_s21, [#allocation18], %s1731_s30, %s1731_s30, %s1732_s11  }
  0x23   : > { %s50_s20 = sadd.s32 1, %s1724_s17  ;;  %s59_s24 = sadd.s32 1, %s1716_s15 }
  0x24   : > { %p52_p7 = scmp.ge.s32.totalorder %s50_s20, 2  ;;  %p66_p8 = scmp.ne.s32.totalorder %s1716_s15, %s1712_s14 }
  0x25   : > { %p67_p9 = scmp.eq.s32.totalorder %s1728_s18, 0  ;;  %p72_p11 = scmp.ne.s32.totalorder %s1712_s14, %s1708_s13 }
  0x26   : > { %s2048_s20 = smov (%p52_p7, %s50_s20), 0  ;;  %p298_p12 = scmp.eq.s32.totalorder %s1825_s19, 1 }
  0x27   : > { %2031 = sst [smem:[#allocation29_spill]] %s2048_s20  ;;  %p1871_p10 = por %p67_p9, %p66_p8 }
  0x28   : > { %s54_s3 = ssub.s32 %s1724_s17, %s2048_s20  ;;  %p1882_p0 = por %p73_p1, %p72_p11 }
  0x29   : > { %p57_p13 = scmp.eq.s32.totalorder %s54_s3, 0  ;;  %p1886_p2 = por %p298_p12, %p66_p8 }
  0x2a   : > { %p304_p4 = scmp.eq.s32.totalorder %s1140_s29, 1  ;;  %p1374_p7 = scmp.lt.s32.totalorder %s1728_s18, 2 }
  0x2b   : > { %s1891_s11 = scalar_select %p57_p13, %s1716_s15, %s59_s24  }
  0x2c   : > { %p1893_p5 = por %p304_p4, %p72_p11  ;;  %s392_s28 = sand.u32 1, %s1716_s15  }
  0x2d   : > { %2035 = sst [smem:[#allocation30_spill]] %s1891_s11  ;;  %s1148_s22 = sshll.u32 %s1724_s17, 2 }
  0x2e   : > { %s2036_s27 = scalar_select %p1893_p5, 1, 0 }
  0x2f   : > { %s1147_s25 = sshll.u32 %s392_s28, 2  ;;  %s401_s3 = scalar_lea.hbm %s2001_s0, %s1148_s22 }
  0x30   : > { %2037 = sst [smem:[#allocation31_spill]] %s2036_s27  ;;  %s403_s4 = sshll.u32 %s401_s3, 4  ;;  %s404_s4 = int_to_ptr.hbm [resolvable:$true] %s403_s4 }
  0x31   : > { %s396_s5 = scalar_lea.vmem [#allocation8], %s1147_s25  ;;  %p1360_p8 = pnand %p1374_p7, %p1871_p10 }
  0x32   : > { %s405_s20 = sshll.u32 %s396_s5, 4  ;;  %s423_s11 = scalar_lea.hbm %s2002_s1, %s1148_s22  ;;  %s406_s20 = int_to_ptr.vmem [resolvable:$true] %s405_s20 }
  0x33   : > { %s412_s27 = sand.u32 1, %s1728_s18   ;;  %s393_s13 = scalar_lea.sflag [#allocation9], %s392_s28 }
  0x34   : > { %1362 = dma.hbm_to_vmem [thread:$0]  (!%p1360_p8), %s404_s4, 64, %s406_s20, %s393_s13  }
  0x35   : > { %s425_s17 = sshll.u32 %s423_s11, 4  ;;  %s416_s15 = scalar_lea.vmem [#allocation11], %s1147_s25  ;;  %s426_s17 = int_to_ptr.hbm [resolvable:$true] %s425_s17 }
  0x36   : > { %s427_s9 = sshll.u32 %s416_s15, 4  ;;  %s413_s12 = scalar_lea.sflag [#allocation12], %s412_s27  ;;  %s428_s9 = int_to_ptr.vmem [resolvable:$true] %s427_s9 }
  0x37   : > { %1365 = dma.hbm_to_vmem [thread:$0]  (!%p1360_p8), %s426_s17, 64, %s428_s9, %s413_s12  }
  0x38   : > { %436 = sbr.rel (%p1833_p3) target bundleno = 998 (0x3e6), region = 60  ;;  %s1912_s5 = sand.u32 (!%p1833_p3), 1, %s1712_s14  }
  0x39   : > { %s1152_s2 = sshll.u32 (!%p1833_p3), %s1912_s5, 2  ;;  %s439_s22 = scalar_lea.sflag (!%p1833_p3), [#allocation9], %s1912_s5 }
  0x3a   : > { %s1916_s28 = scalar_lea.vmem (!%p1833_p3), [#allocation8], %s1152_s2 }
  0x3d   : > { %1683 = dma.done.wait (%p1882_p0), %s439_s22, 64  }
  0x3e   : > { %1685 = vsyncadd (%p1882_p0), %s439_s22, 4294967232  ;;  %s448_s4 = sand.u32 1, %s1825_s19   ;;  %s1923_s13 = scalar_lea.vmem [#allocation11], %s1152_s2 }
  0x3f   : > { %s449_s9 = scalar_lea.sflag [#allocation12], %s448_s4 }
  0x40   : > { %1687 = dma.done.wait (%p1882_p0), %s449_s9, 64  }
  0x41   : > { %1689 = vsyncadd (%p1882_p0), %s449_s9, 4294967232 }
  0x42   : > { %1691 = dma.done.wait (%p73_p1), [#allocation12], 1024  }
  0x43   : > { %1693 = vsyncadd (%p73_p1), [#allocation12], 4294966272 }
  0x44   : > { %1695 = dma.done.wait (%p73_p1), [#allocation15], 2048  }
  0x45   : > { %1697 = vsyncadd (%p73_p1), [#allocation15], 4294965248 }
  0x46   : > { %1699 = dma.done.wait (%p73_p1), [#allocation18], 1024  }
  0x47   : > { %1701 = vsyncadd (%p73_p1), [#allocation18], 4294966272  ;;  %v1299_v0 = vld [vmem:[#allocation14 + $0x38] sm:$0xff]  ;;  %v1298_v2 = vld [vmem:[#allocation14 + $0x30] sm:$0xff]  ;;  %vm781_vm0 = vcmask 7168   ;;  %v1736_v32 = vmov -inf  }
  0x48   : > { %v1315_v1 = vld [vmem:[#allocation13 + $0x38] sm:$0xff]  ;;  %591 = vmatpush.bf16.msra.mxu0 %v1299_v0  ;;  %v1314_v3 = vld [vmem:[#allocation13 + $0x30] sm:$0xff]  ;;  %v1297_v4 = vld [vmem:[#allocation14 + $0x28] sm:$0xff]  ;;  %782 = vst.msk [vmem:[#allocation5] sm:$0xff] %vm781_vm0, %v1736_v32  ;;  %vm806_vm1 = vcmask 64512   ;;  %v1737_v42 = vmov 0  }
  0x49   : > { %766 = vmatpush.bf16.msra.mxu2 %v1315_v1  ;;  %v1313_v5 = vld [vmem:[#allocation13 + $0x28] sm:$0xff]  ;;  %v1296_v6 = vld [vmem:[#allocation14 + $0x20] sm:$0xff]  ;;  %v1295_v8 = vld [vmem:[#allocation14 + $0x18] sm:$0xff]  ;;  %1437 = vset.pattern.permute.xlu0 %v1737_v42  ;;  %v1738_v43 = vmov 0.0   ;;  %vm841_vm2 = vcmask 1043456   ;;  %s1289_s11 = sshll.u32 %s1720_s16, 3 }
  0x4a   : > { %v1312_v7 = vld [vmem:[#allocation13 + $0x20] sm:$0xff]  ;;  %v1311_v9 = vld [vmem:[#allocation13 + $0x18] sm:$0xff]  ;;  %v1294_v10 = vld [vmem:[#allocation14 + $0x10] sm:$0xff]  ;;  %1438 = vset.pattern.permute.xlu1 %v1737_v42  ;;  %1439 = vset.pattern.permute.xlu2 %v1737_v42  ;;  %783 = vst.msk [vmem:[#allocation6] sm:$0xff] %vm781_vm0, %v1738_v43  ;;  %s1158_s27 = sshll.u32 %s1912_s5, 3  ;;  %s981_s3 = scalar_lea.hbm %s2011_s10, %s1289_s11 }
  0x4b   : > { %v1310_v11 = vld [vmem:[#allocation13 + $0x10] sm:$0xff]  ;;  %v1293_v12 = vld [vmem:[#allocation14 + $0x8] sm:$0xff]  ;;  %v1292_v14 = vld [vmem:[#allocation14] sm:$0xff]  ;;  %s2038_s12 = sld [smem:[#allocation36_spill]]  ;;  %s514_s2 = scalar_lea.vmem [#allocation19], %s1158_s27 }
  0x4c   : > { %592 = vmatpush.bf16.msra.mxu0 %v1298_v2  ;;  %v1309_v13 = vld [vmem:[#allocation13 + $0x8] sm:$0xff]  ;;  %v1308_v15 = vld [vmem:[#allocation13] sm:$0xff]  ;;  %v522_v16 = vld [vmem:[%s1923_s13] sm:$0xf]  ;;  %s983_s22 = sshll.u32 %s514_s2, 4  ;;  %s970_s4 = scalar_lea.sflag [#allocation10], %s1912_s5  ;;  %s984_s22 = int_to_ptr.vmem [resolvable:$true] %s983_s22 }
  0x4d   : > { %767 = vmatpush.bf16.msra.mxu2 %v1314_v3  ;;  %v697_v17 = vld [vmem:[%s1916_s28] sm:$0xf]  ;;  %v1307_v30 = vld [vmem:[#allocation16 + $0x38] sm:$0xff]  ;;  %v1305_v33 = vld [vmem:[#allocation16 + $0x28] sm:$0xff]  ;;  %s985_s28 = sshll.u32 %s981_s3, 4  ;;  %s1650_s17 = scalar_lea.hbm %s2011_s10, 16  ;;  %s986_s28 = int_to_ptr.hbm [resolvable:$true] %s985_s28 }
  0x4e   : > { %v1440_v18 = vld [vmem:[%s2008_s7] ss:$0 sm:$0xff]  ;;  %672 = vmatpush.bf16.msra.mxu1 %v1307_v30  ;;  %v1304_v34 = vld [vmem:[#allocation16 + $0x20] sm:$0xff]  ;;  %v1303_v35 = vld [vmem:[#allocation16 + $0x18] sm:$0xff]  ;;  %s1644_s16 = sshra.s32 %s986_s28, 4  ;;  %s1645_s16 = int_to_ptr.hbm [resolvable:$true] %s1644_s16 }
  0x4f   : > { %v1441_v22 = vld [vmem:[%s2007_s6] ss:$0 sm:$0xff]  ;;  %v1301_v37 = vld [vmem:[#allocation16 + $0x8] sm:$0xff]  ;;  %v1300_v40 = vld [vmem:[#allocation16] sm:$0xff]  ;;  %s1646_s9 = scalar_lea.hbm %s1645_s16, 8  ;;  %p1651_p10 = scmp.lt.s32.totalorder %s1645_s16, %s2011_s10 }
  0x50   : > { %593 = vmatpush.bf16.msra.mxu0 %v1297_v4  ;;  %v1306_v31 = vld [vmem:[#allocation16 + $0x30] sm:$0xff]  ;;  %v805_v44 = vld [vmem:[#allocation5] sm:$0xff]  ;;  %v1323_v0 = vld [vmem:[#allocation17 + $0x38] sm:$0xff]  ;;  %p1647_p1 = scmp.ne.s32.totalorder %s1645_s16, %s1646_s9  ;;  %p1652_p11 = scmp.lt.s32.totalorder %s1650_s17, %s1646_s9 }
  0x51   : > { %768 = vmatpush.bf16.msra.mxu2 %v1313_v5  ;;  %v1302_v36 = vld [vmem:[#allocation16 + $0x10] sm:$0xff]  ;;  %v822_v63 = vld [vmem:[#allocation6] sm:$0xff] }
  0x52   : > { %673 = vmatpush.bf16.msra.mxu1 %v1306_v31  ;;  %v1442_v48 = vld [vmem:[%s2009_s8] ss:$0 sm:$0xff]  ;;  %v1321_v5 = vld [vmem:[#allocation17 + $0x28] sm:$0xff]  ;;  %p1648_p3 = pnand %p1647_p1, %p1886_p2  ;;  %p1653_p12 = por %p1652_p11, %p1651_p10 }
  0x53   : > { %v1322_v1 = vld [vmem:[#allocation17 + $0x30] sm:$0xff] }
  0x54   : > { %594 = vmatpush.bf16.msra.mxu0 %v1296_v6  ;;  %v1320_v6 = vld [vmem:[#allocation17 + $0x20] sm:$0xff]  ;;  %v1443_v30 = vld [vmem:[%s2038_s12] ss:$0 sm:$0xff]  ;;  %p1649_p9 = pneg %p1648_p3 }
  0x55   : > { %769 = vmatpush.bf16.msra.mxu2 %v1312_v7 }
  0x56   : > { %674 = vmatpush.bf16.msra.mxu1 %v1305_v33  ;;  %p1654_p13 = pnand %p1653_p12, %p1649_p9 }
  0x58   : > { %595 = vmatpush.bf16.msra.mxu0 %v1295_v8  ;;  %v1319_v8 = vld [vmem:[#allocation17 + $0x18] sm:$0xff] }
  0x59   : > { %770 = vmatpush.bf16.msra.mxu2 %v1311_v9  ;;  %v1318_v9 = vld [vmem:[#allocation17 + $0x10] sm:$0xff] }
  0x5a   : > { %675 = vmatpush.bf16.msra.mxu1 %v1304_v34 }
  0x5c   : > { %596 = vmatpush.bf16.msra.mxu0 %v1294_v10 }
  0x5d   : > { %771 = vmatpush.bf16.msra.mxu2 %v1310_v11 }
  0x5e   : > { %676 = vmatpush.bf16.msra.mxu1 %v1303_v35 }
  0x60   : > { %597 = vmatpush.bf16.msra.mxu0 %v1293_v12 }
  0x61   : > { %772 = vmatpush.bf16.msra.mxu2 %v1309_v13  ;;  %v1317_v13 = vld [vmem:[#allocation17 + $0x8] sm:$0xff] }
  0x62   : > { %677 = vmatpush.bf16.msra.mxu1 %v1302_v36 }
  0x64   : > { %598 = vmatpush.bf16.msra.mxu0 %v1292_v14 }
  0x65   : > { %773 = vmatpush.bf16.msra.mxu2 %v1308_v15 }
  0x66   : > { %678 = vmatpush.bf16.msra.mxu1 %v1301_v37 }
  0x67   : > { %599 = vmatmul.bf16.vlgmr.msra.gmra.mxu0 %v522_v16 }
  0x68   : > { %774 = vmatmul.bf16.vlgmr.msra.gmra.mxu2 %v697_v17 }
  0x6a   : > { %679 = vmatpush.bf16.msra.mxu1 %v1300_v40 }
  0x6d   : > { %680 = vmatmul.bf16.vlgmr.msra.gmra.mxu1 %v522_v16 }
  0xe4   : > { %v600_v19 = vpop.f32.mrf.mxu0 }
  0xe5   : > { %v601_v20 = vadd.f32 %v1440_v18, %v600_v19 }
  0xe7   : > { %v685_v21 = vpack.c.bf16 %v601_v20, %v601_v20 }
  0xe9   : > { %688 = vst [vmem:[#allocation3] sm:$0xf] %v685_v21 }
  0xea   : > { %v681_v49 = vpop.f32.mrf.mxu1 }
  0xeb   : > { %v775_v23 = vpop.f32.mrf.mxu2  ;;  %v682_v50 = vadd.f32 %v1442_v48, %v681_v49 }
  0xec   : > { %v776_v24 = vadd.f32 %v1441_v22, %v775_v23  ;;  %v602_v25 = vpop.f32.mrf.mxu0  ;;  %v1316_v23 = vld [vmem:[#allocation17] sm:$0xff] }
  0xed   : > { %v689_v51 = vpack.c.bf16 %v682_v50, %v682_v50 }
  0xee   : > { %v779_v26 = vpack.c.bf16 %v776_v24, %v776_v24 }
  0xef   : > { %692 = vst [vmem:[#allocation4] sm:$0xf] %v689_v51 }
  0xf0   : > { %780 = vst [vmem:[#allocation2] sm:$0xf] %v779_v26  ;;  %v787_v27 = vld [vmem:[#allocation3] sm:$0xf] }
  0xf1   : > { %799 = vmatpush.bf16.xpose.msrb.mxu0 %v787_v27 }
  0xf2   : > { %v683_v52 = vpop.f32.mrf.mxu1 }
  0xf3   : > { %v777_v28 = vpop.f32.mrf.mxu2 }
  0xf6   : > { %v790_v53 = vld [vmem:[#allocation4] sm:$0xf] }
  0xf7   : > { %v791_v29 = vld [vmem:[#allocation2] sm:$0xf]  ;;  %v843_v54 = vsel %vm841_vm2, %v790_v53, 0 }
  0xf8   : > { %800 = vmatmul.bf16.vlgmr.msrb.gmra.mxu0 %v791_v29  ;;  %852 = vmatpush.bf16.msra.mxu3 %v843_v54 }
  0xfc   : > { %955 = vmatpush.bf16.msrb.mxu3 %v1323_v0 }
 0x100   : > { %956 = vmatpush.bf16.msrb.mxu3 %v1322_v1 }
 0x104   : > { %957 = vmatpush.bf16.msrb.mxu3 %v1321_v5 }
 0x108   : > { %958 = vmatpush.bf16.msrb.mxu3 %v1320_v6 }
 0x10c   : > { %959 = vmatpush.bf16.msrb.mxu3 %v1319_v8 }
 0x110   : > { %960 = vmatpush.bf16.msrb.mxu3 %v1318_v9 }
 0x114   : > { %961 = vmatpush.bf16.msrb.mxu3 %v1317_v13 }
 0x118   : > { %962 = vmatpush.bf16.msrb.mxu3 %v1316_v23 }
 0x175   : > { %v801_v38 = vpop.f32.mrf.mxu0 }
 0x176   : > { %v807_v39 = vsel %vm806_vm1, %v801_v38, -inf }
 0x177   : > { %808 = vmax.xlane.f32.xlu0 %v807_v39 }
 0x17d   : > { %v803_v41 = vpop.f32.mrf.mxu0 }
 0x1ea   : > { %v809_v45 = vpop.xlane.xlu0 %808 }
 0x1eb   : > { %v810_v46 = vmax.f32 %v805_v44, %v809_v45 }
 0x1ed   : > { %v811_v47 = vsub.f32 %v805_v44, %v810_v46  ;;  %860 = vst.msk [vmem:[#allocation5] sm:$0xff] %vm781_vm0, %v810_v46  ;;  %816 = vperm.xlu0 %1437, %v810_v46  }
 0x1ef   : > { %v812_v61 = vmul.f32 1.442695, %v811_v47 }
 0x25f   : > { %v817_v55 = vpop.permute.xlu0 %816 }
 0x260   : > { %v819_v56 = vsub.f32 %v801_v38, %v817_v55 }
 0x262   : > { %v820_v57 = vmul.f32 1.442695, %v819_v56 }
 0x264   : > { %1444 = vpow2.f32 %v820_v57 }
 0x265   : > { %1446 = vpow2.f32 %v812_v61 }
 0x26a   : > { %v1445_v58 = vpop.eup %1444 }
 0x26b   : > { %v824_v59 = vsel %vm806_vm1, %v1445_v58, 0.0  ;;  %v837_v60 = vpack.c.bf16 %v1445_v58, %v1445_v58  ;;  %v1447_v62 = vpop.eup %1446 }
 0x26c   : > { %825 = vadd.xlane.f32.xlu1 %v824_v59  ;;  %v823_v2 = vmul.f32 %v1447_v62, %v822_v63 }
 0x26d   : > { %1255 = vmatmul.msk.bf16.vlgmr.msra.gmra.mxu3 %vm806_vm1, %v837_v60 }
 0x285   : > { %833 = vperm.xlu1 %1438, %v1447_v62  }
 0x2df   : > { %v826_v3 = vpop.xlane.xlu1 %825 }
 0x2e0   : > { %v827_v4 = vadd.f32 %v826_v3, %v823_v2 }
 0x2e2   : > { %829 = vst.msk [vmem:[#allocation6] sm:$0xff] %vm781_vm0, %v827_v4 }
 0x2e9   : > { %v865_v7 = vld [vmem:[#allocation6] sm:$0xff] }
 0x2ea   : > { %1448 = vrcp.f32 %v865_v7  ;;  %v877_v15 = vand.u32 2147483648, %v865_v7  ;;  %v875_v17 = vand.u32 2147483647, %v865_v7  ;;  %vm871_vm4 = vweird.f32 %v865_v7 }
 0x2ec   : > { %v878_v20 = vor.u32 1.1754944e-38, %v877_v15  ;;  %vm876_vm6 = vcmp.eq.f32.partialorder %v875_v17, 8.507059e+37 }
 0x2f0   : > { %v1449_v10 = vpop.eup %1448  ;;  %v854_v11 = vpop.f32.mrf.mxu3 }
 0x2f1   : > { %v867_v12 = vmul.f32 %v1449_v10, %v865_v7  ;;  %vm872_vm3 = vweird.f32 %v1449_v10 }
 0x2f2   : > { %vm873_vm5 = vmor %vm871_vm4, %vm872_vm3 }
 0x2f3   : > { %v868_v14 = vsub.f32 1.0, %v867_v12 }
 0x2f5   : > { %v869_v16 = vmul.f32 %v1449_v10, %v868_v14 }
 0x2f7   : > { %v870_v18 = vadd.f32 %v1449_v10, %v869_v16  ;;  %v834_v24 = vpop.permute.xlu1 %833 }
 0x2f8   : > { %v856_v19 = vpop.f32.mrf.mxu3  ;;  %v836_v25 = vmul.f32 0.0, %v834_v24 }
 0x2f9   : > { %v874_v21 = vsel %vm873_vm5, %v1449_v10, %v870_v18 }
 0x2fa   : > { %v879_v22 = vsel %vm876_vm6, %v878_v20, %v874_v21  ;;  %v858_v26 = vadd.f32 %v854_v11, %v836_v25 }
 0x2fb   : > { %882 = vperm.xlu2 %1439, %v879_v22  }
 0x355   : > { %v883_v27 = vpop.permute.xlu2 %882 }
 0x356   : > { %v885_v28 = vmul.f32 %v883_v27, %v858_v26 }
 0x358   : > { %v886_v29 = vpack.c.bf16 %v885_v28, %v885_v28 }
 0x35a   : > { %963 = vmatmul.bf16.vlgmr.msrb.gmra.mxu3 %v886_v29 }
 0x3dd   : > { %v964_v31 = vpop.f32.mrf.mxu3 }
 0x3de   : > { %v965_v32 = vadd.f32 %v1443_v30, %v964_v31 }
 0x3e0   : > { %968 = vst [vmem:[%s514_s2] sm:$0xff] %v965_v32 }
 0x3e1   : > { %1657 = shalt.err (!%p1654_p13)
}
 0x3e2   : > { %1344 = dma.vmem_to_hbm [thread:$0]  (%p1886_p2), %s984_s22, 128, %s986_s28, %s970_s4  }
 0x3e5   : > { %v966_v33 = vpop.f32.mrf.mxu3 }
 0x3e6 PF: > { %s2039_s5 = sld [smem:[#allocation26_spill]]  ;;  %p1367_p0 = pnand %p1146_p6, %p1893_p5 }
 0x3e8   : > { %p1368_p4 = pneg %p1367_p0 }
 0x3ec   : > { %s997_s26 = sand.u32 1, %s2039_s5  }
 0x3ed   : > { %s998_s11 = scalar_lea.sflag [#allocation10], %s997_s26 }
 0x3ee   : > { %1703 = dma.done.wait (%p1368_p4), %s998_s11, 128  }
 0x3ef   : > { %1705 = vsyncadd (%p1368_p4), %s998_s11, 4294967168  ;;  %s31_s18 = sadd.s32 1, %s1728_s18   ;;  %s2041_s27 = sld [smem:[#allocation27_spill]] }
 0x3f0   : > { %p28_p7 = scmp.ge.s32.totalorder %s31_s18, 4   ;;  %s2042_s15 = sld [smem:[#allocation30_spill]] }
 0x3f1   : > { %s2043_s16 = sld [smem:[#allocation28_spill]]  ;;  %s2045_s13 = smov %s1712_s14 }
 0x3f2   : > { %s2044_s17 = sld [smem:[#allocation29_spill]]  ;;  %30 = sbr.rel (!%p28_p7) target bundleno = 16 (0x10), region = 150 }
 0x3f5   : > { %s2046_s14 = smov %s2041_s27 }
 0x3f7   :  { %1004 = vsyncpa [#allocation9], 1 }
 0x3f8   :  { %1006 = vsyncpa [#allocation9 + $0x1], 1 }
 0x3f9   :  { %1007 = vsyncpa [#allocation12], 1 }
 0x3fa   :  { %1009 = vsyncpa [#allocation12 + $0x1], 1 }
 0x3fb   :  { %1010 = vsyncpa [#allocation15], 1 }
 0x3fc   :  { %1011 = vsyncpa [#allocation18], 1 }
 0x3fd   :  { %1012 = vsyncpa [#allocation10], 1 }
 0x3fe   :  { %1014 = vsyncpa [#allocation10 + $0x1], 1 }

</bundles_post_ra>
